<compile_context>
chip_gen: v5e
topology: v5e:2x2
jax: 0.10.0
libtpu: 0.0.40
codegen_flags: <defaults>
</compile_context>

<pallas_src>
import jax
import jax.numpy as jnp
import numpy as np
from jax.experimental import pallas as pl
from jax.experimental.pallas import tpu as pltpu

HIDDEN_SIZE = 64
INPUT_SIZE = 4
NUM_LAYERS = 2
SEQ_LEN = 3
BATCH = 2

H = HIDDEN_SIZE
GATES = 4 * H            # 256  (exactly one 256-wide MXU pass on v6e/v7x)
HPAD = 2 * H             # 128: h/c carried as 128-lane tiles (right half = padding)
IP = 16                  # input features padded to a bf16 sublane multiple
BP_MIN = 16              # batch padded to a bf16 sublane tile
WCOLS = 256              # weight-slab lane width
GATE_PERM = (0, 3, 1, 2)  # PyTorch gate order [i,f,g,o] -> kernel order [i,o,f,g]

# --- weight-slab row offsets (all multiples of 16 -> bf16 sublane-tile aligned) ---
_OFF_WIH0 = 0                       # (IP, 256)           rows INPUT_SIZE..IP are zero
_OFF_WHH0 = _OFF_WIH0 + IP          # (128, 256)          rows 64..128 are zero
_OFF_WIH1 = _OFF_WHH0 + HPAD        # (128, 256)          rows 64..128 are zero
_OFF_WHH1 = _OFF_WIH1 + HPAD        # (128, 256)          rows 64..128 are zero
_OFF_FW1 = _OFF_WHH1 + HPAD         # (T*128, 256)        per-t block: 64 real + 64 zero rows
_OFF_FW2 = _OFF_FW1 + SEQ_LEN * HPAD  # (256, 128) in cols 0:128
_OFF_FW3 = _OFF_FW2 + 256           # (128, 64)  in cols 0:64
_OFF_FW4 = _OFF_FW3 + 128           # (64, 32)   in cols 0:32
_OFF_FW5 = _OFF_FW4 + 64            # (32, 128)  real cols 0:16, zeros 16:128
_W_ROWS = _OFF_FW5 + 32             # 1264 rows total (~632 KiB bf16)


# ---------------------------------------------------------------------------
# Pallas kernel: whole forward pass (LSTM unrolled over time + MLP head)
# ---------------------------------------------------------------------------
def _lstm_mlp_kernel(x_ref, w_ref, b_ref, out_ref):
    # x_ref : (T*Bp, IP) bf16, time-major
    # w_ref : (_W_ROWS, 256) bf16 packed weight slab
    # b_ref : (8, 256) f32 packed bias slab
    # out_ref: (Bp, 128) f32 (cols 16:128 are zero-padding)
    Bp = out_ref.shape[0]
    T = x_ref.shape[0] // Bp
    bf16 = jnp.bfloat16
    f32 = jnp.float32

    def w(off, rows, cols=WCOLS):
        blk = w_ref[off:off + rows, :]
        return blk if cols == WCOLS else blk[:, :cols]

    def b(row, cols):
        return b_ref[row:row + 1, :][:, :cols]          # (1, cols) f32

    # ---- loop-invariant values (hoisted) ------------------------------------
    # Gate order in the packed weights is [i, o, f, g]; g is the last quarter.
    lane = jax.lax.broadcasted_iota(jnp.int32, (Bp, GATES), 1)
    is_g = lane >= 3 * H
    sc = jnp.where(is_g, 1.0, 0.5).astype(f32)          # tanh pre-scale
    off_c = jnp.where(is_g, 0.0, 0.5).astype(f32)       # sigmoid affine fixup

    whh0 = w(_OFF_WHH0, HPAD)                            # (128, 256), rows 64: zero
    wih1 = w(_OFF_WIH1, HPAD)
    whh1 = w(_OFF_WHH1, HPAD)
    b1 = jnp.broadcast_to(b(1, GATES), (Bp, GATES))

    # Layer-0 input projection for ALL timesteps in one matmul (off the
    # recurrence); b0 is already fused into the bias row.
    xproj = (jnp.dot(x_ref[...], w(_OFF_WIH0, IP),
                     preferred_element_type=f32) + b(0, GATES))   # (T*Bp, 256)

    def activate(gates):
        # One full-width EUP pass: sigmoid(x) = 0.5*(1 + tanh(x/2)) for i/o/f,
        # plain tanh(x) for g — selected via the hoisted per-lane constants.
        t = jnp.tanh(gates * sc)
        return t * sc + off_c

    def cell(act, c):
        # act: (Bp, 256) in gate order [i, o | f, g]; c: (Bp, 128), left half valid.
        L = act[:, :HPAD]                                 # [i | o]  (aligned slice)
        R = act[:, HPAD:]                                 # [f | g]  (aligned slice)
        p1 = L * pltpu.roll(R, shift=H, axis=1)           # [i*g | o*f]
        p2 = R * c                                        # [f*c | .]
        c_new = p1 + p2                                   # left half = new cell state
        h_new = pltpu.roll(L, shift=H, axis=1) * jnp.tanh(c_new)   # [o*tanh(c) | .]
        # h carried in bf16 (matmul operand dtype); c stays f32 (accumulator).
        return h_new.astype(bf16), c_new

    h0 = jnp.zeros((Bp, HPAD), bf16)
    h1 = jnp.zeros((Bp, HPAD), bf16)
    c0 = jnp.zeros((Bp, HPAD), f32)
    c1 = jnp.zeros((Bp, HPAD), f32)

    # fc1 as a per-timestep accumulation: feat @ fw1 == sum_t h1_t @ fw1[t*H:(t+1)*H]
    head = jnp.broadcast_to(b(2, 256), (Bp, 256))

    for t in range(T):                                    # T = 3, fully unrolled
        # Layer-1 recurrent product depends only on h1_{t-1} -> off layer-0's chain.
        r1 = jnp.dot(h1, whh1, preferred_element_type=f32)

        # Layer 0: only the recurrent matmul is on the serial chain.
        g0 = xproj[t * Bp:(t + 1) * Bp, :] + jnp.dot(
            h0, whh0, preferred_element_type=f32)
        h0, c0 = cell(activate(g0), c0)

        # Layer 1 (un-fused, no concat).
        g1 = jnp.dot(h0, wih1, preferred_element_type=f32) + r1 + b1
        h1, c1 = cell(activate(g1), c1)

        head = head + jnp.dot(h1, w(_OFF_FW1 + t * HPAD, HPAD),
                              preferred_element_type=f32)

    def linear(v, w_off, rows, cols, b_row):
        return jnp.dot(v.astype(bf16), w(w_off, rows, cols),
                       preferred_element_type=f32) + b(b_row, cols)

    y = jax.nn.relu(head)
    y = jax.nn.relu(linear(y, _OFF_FW2, 256, 128, 3))
    y = jax.nn.relu(linear(y, _OFF_FW3, 128, 64, 4))
    y = jax.nn.relu(linear(y, _OFF_FW4, 64, 32, 5))
    y = linear(y, _OFF_FW5, 32, 128, 6)                   # cols 16:128 are zero
    out_ref[...] = y.astype(out_ref.dtype)


# ---------------------------------------------------------------------------
# Wrapper
# ---------------------------------------------------------------------------
@jax.jit
def lstm_forward(x, wslab, bslab):
    B, T, I = x.shape
    bp = max(BP_MIN, ((B + BP_MIN - 1) // BP_MIN) * BP_MIN)

    # Time-major (T*Bp, IP) bf16 slab; batch padded to 16, features padded to 16.
    x_pad = jnp.zeros((T, bp, IP), jnp.float32)
    x_pad = x_pad.at[:, :B, :I].set(jnp.transpose(x, (1, 0, 2)))
    x2d = x_pad.reshape(T * bp, IP).astype(jnp.bfloat16)

    vmem = pl.BlockSpec(memory_space=pltpu.MemorySpace.VMEM)
    # Single un-gridded call: whole working set (<1 MiB) is VMEM-resident on
    # v5e/v6e/v7x; splitting across v7x's two TensorCores would be a regression
    # at this batch size.
    out = pl.pallas_call(
        _lstm_mlp_kernel,
        out_shape=jax.ShapeDtypeStruct((bp, 128), jnp.float32),
        in_specs=[vmem, vmem, vmem],
        out_specs=vmem,
        cost_estimate=pl.CostEstimate(flops=14_000_000, transcendentals=40_000,
                                      bytes_accessed=700_000),
    )(x2d, wslab, bslab)
    return out[:B, :16]


# ---------------------------------------------------------------------------
# Deterministic PyTorch-layout parameters + kernel packing
# ---------------------------------------------------------------------------
def init_raw_params(key):
    keys = iter(jax.random.split(key, 32))

    def uniform(shape, bound):
        return jax.random.uniform(next(keys), shape, jnp.float32,
                                  minval=-bound, maxval=bound)

    k_lstm = 1.0 / np.sqrt(HIDDEN_SIZE)
    in_sizes = [INPUT_SIZE, HIDDEN_SIZE]
    lstm = []
    for layer in range(NUM_LAYERS):
        lstm.append((
            uniform((4 * HIDDEN_SIZE, in_sizes[layer]), k_lstm),   # W_ih
            uniform((4 * HIDDEN_SIZE, HIDDEN_SIZE), k_lstm),       # W_hh
            uniform((4 * HIDDEN_SIZE,), k_lstm),                   # b_ih
            uniform((4 * HIDDEN_SIZE,), k_lstm),                   # b_hh
        ))

    fc_dims = [(HIDDEN_SIZE * SEQ_LEN, 256), (256, 128), (128, 64),
               (64, 32), (32, 16)]
    fc = []
    for fan_in, fan_out in fc_dims:
        k = 1.0 / np.sqrt(fan_in)
        fc.append((uniform((fan_out, fan_in), k), uniform((fan_out,), k)))

    return {"lstm": lstm, "fc": fc}


def pack_params(raw):
    (wih0, whh0, bih0, bhh0), (wih1, whh1, bih1, bhh1) = raw["lstm"]
    fcs = raw["fc"]

    def reorder_cols(w_t):      # (in, 4H): permute gate blocks [i,f,g,o] -> [i,o,f,g]
        return jnp.concatenate([w_t[:, k * H:(k + 1) * H] for k in GATE_PERM], axis=1)

    def reorder_bias(v):
        return jnp.concatenate([v[k * H:(k + 1) * H] for k in GATE_PERM])

    wslab = jnp.zeros((_W_ROWS, WCOLS), jnp.float32)
    wslab = wslab.at[_OFF_WIH0:_OFF_WIH0 + INPUT_SIZE, :].set(reorder_cols(wih0.T))
    wslab = wslab.at[_OFF_WHH0:_OFF_WHH0 + H, :].set(reorder_cols(whh0.T))
    wslab = wslab.at[_OFF_WIH1:_OFF_WIH1 + H, :].set(reorder_cols(wih1.T))
    wslab = wslab.at[_OFF_WHH1:_OFF_WHH1 + H, :].set(reorder_cols(whh1.T))

    fw1, fb1 = fcs[0]
    fw1_t = fw1.T                                          # (T*H, 256)
    for t in range(SEQ_LEN):
        r0 = _OFF_FW1 + t * HPAD
        wslab = wslab.at[r0:r0 + H, :].set(fw1_t[t * H:(t + 1) * H, :])

    fw2, fb2 = fcs[1]
    fw3, fb3 = fcs[2]
    fw4, fb4 = fcs[3]
    fw5, fb5 = fcs[4]
    wslab = wslab.at[_OFF_FW2:_OFF_FW2 + 256, :128].set(fw2.T)
    wslab = wslab.at[_OFF_FW3:_OFF_FW3 + 128, :64].set(fw3.T)
    wslab = wslab.at[_OFF_FW4:_OFF_FW4 + 64, :32].set(fw4.T)
    wslab = wslab.at[_OFF_FW5:_OFF_FW5 + 32, :16].set(fw5.T)

    bslab = jnp.zeros((8, WCOLS), jnp.float32)
    bslab = bslab.at[0, :].set(reorder_bias(bih0 + bhh0))
    bslab = bslab.at[1, :].set(reorder_bias(bih1 + bhh1))
    bslab = bslab.at[2, :256].set(fb1)
    bslab = bslab.at[3, :128].set(fb2)
    bslab = bslab.at[4, :64].set(fb3)
    bslab = bslab.at[5, :32].set(fb4)
    bslab = bslab.at[6, :16].set(fb5)

    return wslab.astype(jnp.bfloat16), bslab


# ---------------------------------------------------------------------------
# Pure-JAX f32 reference (faithful to the PyTorch module)
# ---------------------------------------------------------------------------
def reference_forward(x, raw):
    Hh = HIDDEN_SIZE
    B, T, _ = x.shape

    def cell(xt, h, c, w_ih, w_hh, b_ih, b_hh):
        g = xt @ w_ih.T + b_ih + h @ w_hh.T + b_hh
        i = jax.nn.sigmoid(g[:, 0 * Hh:1 * Hh])
        f = jax.nn.sigmoid(g[:, 1 * Hh:2 * Hh])
        gg = jnp.tanh(g[:, 2 * Hh:3 * Hh])
        o = jax.nn.sigmoid(g[:, 3 * Hh:4 * Hh])
        c = f * c + i * gg
        h = o * jnp.tanh(c)
        return h, c

    (wih0, whh0, bih0, bhh0), (wih1, whh1, bih1, bhh1) = raw["lstm"]
    h0 = c0 = jnp.zeros((B, Hh), jnp.float32)
    h1 = c1 = jnp.zeros((B, Hh), jnp.float32)
    outs = []
    for t in range(T):
        h0, c0 = cell(x[:, t, :], h0, c0, wih0, whh0, bih0, bhh0)
        h1, c1 = cell(h0, h1, c1, wih1, whh1, bih1, bhh1)
        outs.append(h1)
    feat = jnp.concatenate(outs, axis=-1)

    y = feat
    for idx, (w_, b_) in enumerate(raw["fc"]):
        y = y @ w_.T + b_
        if idx < len(raw["fc"]) - 1:
            y = jax.nn.relu(y)
    return y


if __name__ == "__main__":
    key = jax.random.PRNGKey(0)
    k_x, k_p = jax.random.split(key)

    x = jax.random.normal(k_x, (BATCH, SEQ_LEN, INPUT_SIZE), jnp.float32)
    raw_params = init_raw_params(k_p)
    wslab, bslab = pack_params(raw_params)

    out = lstm_forward(x, wslab, bslab)
    out = jax.block_until_ready(out)

    ref = reference_forward(x, raw_params)
    # bf16 matmul operands (f32 accumulation) -> loosened tolerance vs f32 ref.
    np.testing.assert_allclose(np.asarray(out), np.asarray(ref),
                               rtol=2e-2, atol=2e-2)

    assert out.shape == (BATCH, 16)
    print("KERNEL_OK")
</pallas_src>

<mosaic_0001>
module attributes {stable_mosaic.version = 11 : i64} {
  func.func @_lstm_mlp_kernel(%arg0: memref<48x16xbf16, #tpu.memory_space<vmem>>, %arg1: memref<1264x256xbf16, #tpu.memory_space<vmem>>, %arg2: memref<8x256xf32, #tpu.memory_space<vmem>>, %arg3: memref<16x128xf32, #tpu.memory_space<vmem>>) attributes {dimension_semantics = [], scalar_prefetch = 0 : i64, scratch_operands = 0 : i64, tpu.core_type = #tpu.core_type<tc>} {
    %0 = tpu.iota {dimensions = array<i32: 1>} : vector<16x256xi32>
    %c192_i32 = arith.constant 192 : i32
    %1 = vector.broadcast %c192_i32 : i32 to vector<16x256xi32>
    %2 = arith.cmpi sge, %0, %1 : vector<16x256xi32>
    %cst = arith.constant 1.000000e+00 : f32
    %cst_0 = arith.constant 5.000000e-01 : f32
    %3 = vector.broadcast %cst : f32 to vector<16x256xf32>
    %4 = vector.broadcast %cst_0 : f32 to vector<16x256xf32>
    %5 = arith.select %2, %3, %4 : vector<16x256xi1>, vector<16x256xf32>
    %cst_1 = arith.constant 0.000000e+00 : f32
    %cst_2 = arith.constant 5.000000e-01 : f32
    %6 = vector.broadcast %cst_1 : f32 to vector<16x256xf32>
    %7 = vector.broadcast %cst_2 : f32 to vector<16x256xf32>
    %8 = arith.select %2, %6, %7 : vector<16x256xi1>, vector<16x256xf32>
    %c16 = arith.constant 16 : index
    %c0 = arith.constant 0 : index
    %9 = vector.load %arg1[%c16, %c0] : memref<1264x256xbf16, #tpu.memory_space<vmem>>, vector<128x256xbf16>
    %c144 = arith.constant 144 : index
    %c0_3 = arith.constant 0 : index
    %10 = vector.load %arg1[%c144, %c0_3] : memref<1264x256xbf16, #tpu.memory_space<vmem>>, vector<128x256xbf16>
    %c272 = arith.constant 272 : index
    %c0_4 = arith.constant 0 : index
    %11 = vector.load %arg1[%c272, %c0_4] : memref<1264x256xbf16, #tpu.memory_space<vmem>>, vector<128x256xbf16>
    %c1 = arith.constant 1 : index
    %c0_5 = arith.constant 0 : index
    %12 = vector.load %arg2[%c1, %c0_5] : memref<8x256xf32, #tpu.memory_space<vmem>>, vector<1x256xf32>
    %13 = vector.shape_cast %12 : vector<1x256xf32> to vector<1x256xf32>
    %14 = vector.broadcast %13 : vector<1x256xf32> to vector<16x256xf32>
    %c0_6 = arith.constant 0 : index
    %c0_7 = arith.constant 0 : index
    %15 = vector.load %arg0[%c0_6, %c0_7] : memref<48x16xbf16, #tpu.memory_space<vmem>>, vector<48x16xbf16>
    %c0_8 = arith.constant 0 : index
    %c0_9 = arith.constant 0 : index
    %16 = vector.load %arg1[%c0_8, %c0_9] : memref<1264x256xbf16, #tpu.memory_space<vmem>>, vector<16x256xbf16>
    %cst_10 = arith.constant dense<0.000000e+00> : vector<48x256xf32>
    %17 = tpu.matmul %15, %16, %cst_10 {dimension_numbers = #tpu.dot_dimension_numbers<[1], [0], [0], [1], [0, 0, 1, 1], [], []>} : vector<48x16xbf16>, vector<16x256xbf16>, vector<48x256xf32> -> vector<48x256xf32>
    %c0_11 = arith.constant 0 : index
    %c0_12 = arith.constant 0 : index
    %18 = vector.load %arg2[%c0_11, %c0_12] : memref<8x256xf32, #tpu.memory_space<vmem>>, vector<1x256xf32>
    %19 = vector.broadcast %18 : vector<1x256xf32> to vector<48x256xf32>
    %20 = arith.addf %17, %19 : vector<48x256xf32>
    %cst_13 = arith.constant 0.000000e+00 : bf16
    %21 = vector.broadcast %cst_13 : bf16 to vector<16x128xbf16>
    %cst_14 = arith.constant 0.000000e+00 : bf16
    %22 = vector.broadcast %cst_14 : bf16 to vector<16x128xbf16>
    %cst_15 = arith.constant 0.000000e+00 : f32
    %23 = vector.broadcast %cst_15 : f32 to vector<16x128xf32>
    %cst_16 = arith.constant 0.000000e+00 : f32
    %24 = vector.broadcast %cst_16 : f32 to vector<16x128xf32>
    %c2 = arith.constant 2 : index
    %c0_17 = arith.constant 0 : index
    %25 = vector.load %arg2[%c2, %c0_17] : memref<8x256xf32, #tpu.memory_space<vmem>>, vector<1x256xf32>
    %26 = vector.shape_cast %25 : vector<1x256xf32> to vector<1x256xf32>
    %27 = vector.broadcast %26 : vector<1x256xf32> to vector<16x256xf32>
    %cst_18 = arith.constant dense<0.000000e+00> : vector<16x256xf32>
    %28 = tpu.matmul %22, %11, %cst_18 {dimension_numbers = #tpu.dot_dimension_numbers<[1], [0], [0], [1], [0, 0, 1, 1], [], []>} : vector<16x128xbf16>, vector<128x256xbf16>, vector<16x256xf32> -> vector<16x256xf32>
    %29 = vector.extract_strided_slice %20 {offsets = [0, 0], sizes = [16, 256], strides = [1, 1]} : vector<48x256xf32> to vector<16x256xf32>
    %cst_19 = arith.constant dense<0.000000e+00> : vector<16x256xf32>
    %30 = tpu.matmul %21, %9, %cst_19 {dimension_numbers = #tpu.dot_dimension_numbers<[1], [0], [0], [1], [0, 0, 1, 1], [], []>} : vector<16x128xbf16>, vector<128x256xbf16>, vector<16x256xf32> -> vector<16x256xf32>
    %31 = arith.addf %29, %30 : vector<16x256xf32>
    %32 = arith.mulf %31, %5 : vector<16x256xf32>
    %33 = math.tanh %32 : vector<16x256xf32>
    %34 = arith.mulf %33, %5 : vector<16x256xf32>
    %35 = arith.addf %34, %8 : vector<16x256xf32>
    %36 = vector.extract_strided_slice %35 {offsets = [0, 0], sizes = [16, 128], strides = [1, 1]} : vector<16x256xf32> to vector<16x128xf32>
    %37 = vector.extract_strided_slice %35 {offsets = [0, 128], sizes = [16, 128], strides = [1, 1]} : vector<16x256xf32> to vector<16x128xf32>
    %c64_i32 = arith.constant 64 : i32
    %38 = tpu.dynamic_rotate %37 by %c64_i32 dim 1 : vector<16x128xf32>, i32 -> vector<16x128xf32>
    %39 = arith.mulf %36, %38 : vector<16x128xf32>
    %40 = arith.mulf %37, %23 : vector<16x128xf32>
    %41 = arith.addf %39, %40 : vector<16x128xf32>
    %c64_i32_20 = arith.constant 64 : i32
    %42 = tpu.dynamic_rotate %36 by %c64_i32_20 dim 1 : vector<16x128xf32>, i32 -> vector<16x128xf32>
    %43 = math.tanh %41 : vector<16x128xf32>
    %44 = arith.mulf %42, %43 : vector<16x128xf32>
    %45 = arith.truncf %44 : vector<16x128xf32> to vector<16x128xbf16>
    %cst_21 = arith.constant dense<0.000000e+00> : vector<16x256xf32>
    %46 = tpu.matmul %45, %10, %cst_21 {dimension_numbers = #tpu.dot_dimension_numbers<[1], [0], [0], [1], [0, 0, 1, 1], [], []>} : vector<16x128xbf16>, vector<128x256xbf16>, vector<16x256xf32> -> vector<16x256xf32>
    %47 = arith.addf %46, %28 : vector<16x256xf32>
    %48 = arith.addf %47, %14 : vector<16x256xf32>
    %49 = arith.mulf %48, %5 : vector<16x256xf32>
    %50 = math.tanh %49 : vector<16x256xf32>
    %51 = arith.mulf %50, %5 : vector<16x256xf32>
    %52 = arith.addf %51, %8 : vector<16x256xf32>
    %53 = vector.extract_strided_slice %52 {offsets = [0, 0], sizes = [16, 128], strides = [1, 1]} : vector<16x256xf32> to vector<16x128xf32>
    %54 = vector.extract_strided_slice %52 {offsets = [0, 128], sizes = [16, 128], strides = [1, 1]} : vector<16x256xf32> to vector<16x128xf32>
    %c64_i32_22 = arith.constant 64 : i32
    %55 = tpu.dynamic_rotate %54 by %c64_i32_22 dim 1 : vector<16x128xf32>, i32 -> vector<16x128xf32>
    %56 = arith.mulf %53, %55 : vector<16x128xf32>
    %57 = arith.mulf %54, %24 : vector<16x128xf32>
    %58 = arith.addf %56, %57 : vector<16x128xf32>
    %c64_i32_23 = arith.constant 64 : i32
    %59 = tpu.dynamic_rotate %53 by %c64_i32_23 dim 1 : vector<16x128xf32>, i32 -> vector<16x128xf32>
    %60 = math.tanh %58 : vector<16x128xf32>
    %61 = arith.mulf %59, %60 : vector<16x128xf32>
    %62 = arith.truncf %61 : vector<16x128xf32> to vector<16x128xbf16>
    %c400 = arith.constant 400 : index
    %c0_24 = arith.constant 0 : index
    %63 = vector.load %arg1[%c400, %c0_24] : memref<1264x256xbf16, #tpu.memory_space<vmem>>, vector<128x256xbf16>
    %cst_25 = arith.constant dense<0.000000e+00> : vector<16x256xf32>
    %64 = tpu.matmul %62, %63, %cst_25 {dimension_numbers = #tpu.dot_dimension_numbers<[1], [0], [0], [1], [0, 0, 1, 1], [], []>} : vector<16x128xbf16>, vector<128x256xbf16>, vector<16x256xf32> -> vector<16x256xf32>
    %65 = arith.addf %27, %64 : vector<16x256xf32>
    %cst_26 = arith.constant dense<0.000000e+00> : vector<16x256xf32>
    %66 = tpu.matmul %62, %11, %cst_26 {dimension_numbers = #tpu.dot_dimension_numbers<[1], [0], [0], [1], [0, 0, 1, 1], [], []>} : vector<16x128xbf16>, vector<128x256xbf16>, vector<16x256xf32> -> vector<16x256xf32>
    %67 = vector.extract_strided_slice %20 {offsets = [16, 0], sizes = [16, 256], strides = [1, 1]} : vector<48x256xf32> to vector<16x256xf32>
    %cst_27 = arith.constant dense<0.000000e+00> : vector<16x256xf32>
    %68 = tpu.matmul %45, %9, %cst_27 {dimension_numbers = #tpu.dot_dimension_numbers<[1], [0], [0], [1], [0, 0, 1, 1], [], []>} : vector<16x128xbf16>, vector<128x256xbf16>, vector<16x256xf32> -> vector<16x256xf32>
    %69 = arith.addf %67, %68 : vector<16x256xf32>
    %70 = arith.mulf %69, %5 : vector<16x256xf32>
    %71 = math.tanh %70 : vector<16x256xf32>
    %72 = arith.mulf %71, %5 : vector<16x256xf32>
    %73 = arith.addf %72, %8 : vector<16x256xf32>
    %74 = vector.extract_strided_slice %73 {offsets = [0, 0], sizes = [16, 128], strides = [1, 1]} : vector<16x256xf32> to vector<16x128xf32>
    %75 = vector.extract_strided_slice %73 {offsets = [0, 128], sizes = [16, 128], strides = [1, 1]} : vector<16x256xf32> to vector<16x128xf32>
    %c64_i32_28 = arith.constant 64 : i32
    %76 = tpu.dynamic_rotate %75 by %c64_i32_28 dim 1 : vector<16x128xf32>, i32 -> vector<16x128xf32>
    %77 = arith.mulf %74, %76 : vector<16x128xf32>
    %78 = arith.mulf %75, %41 : vector<16x128xf32>
    %79 = arith.addf %77, %78 : vector<16x128xf32>
    %c64_i32_29 = arith.constant 64 : i32
    %80 = tpu.dynamic_rotate %74 by %c64_i32_29 dim 1 : vector<16x128xf32>, i32 -> vector<16x128xf32>
    %81 = math.tanh %79 : vector<16x128xf32>
    %82 = arith.mulf %80, %81 : vector<16x128xf32>
    %83 = arith.truncf %82 : vector<16x128xf32> to vector<16x128xbf16>
    %cst_30 = arith.constant dense<0.000000e+00> : vector<16x256xf32>
    %84 = tpu.matmul %83, %10, %cst_30 {dimension_numbers = #tpu.dot_dimension_numbers<[1], [0], [0], [1], [0, 0, 1, 1], [], []>} : vector<16x128xbf16>, vector<128x256xbf16>, vector<16x256xf32> -> vector<16x256xf32>
    %85 = arith.addf %84, %66 : vector<16x256xf32>
    %86 = arith.addf %85, %14 : vector<16x256xf32>
    %87 = arith.mulf %86, %5 : vector<16x256xf32>
    %88 = math.tanh %87 : vector<16x256xf32>
    %89 = arith.mulf %88, %5 : vector<16x256xf32>
    %90 = arith.addf %89, %8 : vector<16x256xf32>
    %91 = vector.extract_strided_slice %90 {offsets = [0, 0], sizes = [16, 128], strides = [1, 1]} : vector<16x256xf32> to vector<16x128xf32>
    %92 = vector.extract_strided_slice %90 {offsets = [0, 128], sizes = [16, 128], strides = [1, 1]} : vector<16x256xf32> to vector<16x128xf32>
    %c64_i32_31 = arith.constant 64 : i32
    %93 = tpu.dynamic_rotate %92 by %c64_i32_31 dim 1 : vector<16x128xf32>, i32 -> vector<16x128xf32>
    %94 = arith.mulf %91, %93 : vector<16x128xf32>
    %95 = arith.mulf %92, %58 : vector<16x128xf32>
    %96 = arith.addf %94, %95 : vector<16x128xf32>
    %c64_i32_32 = arith.constant 64 : i32
    %97 = tpu.dynamic_rotate %91 by %c64_i32_32 dim 1 : vector<16x128xf32>, i32 -> vector<16x128xf32>
    %98 = math.tanh %96 : vector<16x128xf32>
    %99 = arith.mulf %97, %98 : vector<16x128xf32>
    %100 = arith.truncf %99 : vector<16x128xf32> to vector<16x128xbf16>
    %c528 = arith.constant 528 : index
    %c0_33 = arith.constant 0 : index
    %101 = vector.load %arg1[%c528, %c0_33] : memref<1264x256xbf16, #tpu.memory_space<vmem>>, vector<128x256xbf16>
    %cst_34 = arith.constant dense<0.000000e+00> : vector<16x256xf32>
    %102 = tpu.matmul %100, %101, %cst_34 {dimension_numbers = #tpu.dot_dimension_numbers<[1], [0], [0], [1], [0, 0, 1, 1], [], []>} : vector<16x128xbf16>, vector<128x256xbf16>, vector<16x256xf32> -> vector<16x256xf32>
    %103 = arith.addf %65, %102 : vector<16x256xf32>
    %cst_35 = arith.constant dense<0.000000e+00> : vector<16x256xf32>
    %104 = tpu.matmul %100, %11, %cst_35 {dimension_numbers = #tpu.dot_dimension_numbers<[1], [0], [0], [1], [0, 0, 1, 1], [], []>} : vector<16x128xbf16>, vector<128x256xbf16>, vector<16x256xf32> -> vector<16x256xf32>
    %105 = vector.extract_strided_slice %20 {offsets = [32, 0], sizes = [16, 256], strides = [1, 1]} : vector<48x256xf32> to vector<16x256xf32>
    %cst_36 = arith.constant dense<0.000000e+00> : vector<16x256xf32>
    %106 = tpu.matmul %83, %9, %cst_36 {dimension_numbers = #tpu.dot_dimension_numbers<[1], [0], [0], [1], [0, 0, 1, 1], [], []>} : vector<16x128xbf16>, vector<128x256xbf16>, vector<16x256xf32> -> vector<16x256xf32>
    %107 = arith.addf %105, %106 : vector<16x256xf32>
    %108 = arith.mulf %107, %5 : vector<16x256xf32>
    %109 = math.tanh %108 : vector<16x256xf32>
    %110 = arith.mulf %109, %5 : vector<16x256xf32>
    %111 = arith.addf %110, %8 : vector<16x256xf32>
    %112 = vector.extract_strided_slice %111 {offsets = [0, 0], sizes = [16, 128], strides = [1, 1]} : vector<16x256xf32> to vector<16x128xf32>
    %113 = vector.extract_strided_slice %111 {offsets = [0, 128], sizes = [16, 128], strides = [1, 1]} : vector<16x256xf32> to vector<16x128xf32>
    %c64_i32_37 = arith.constant 64 : i32
    %114 = tpu.dynamic_rotate %113 by %c64_i32_37 dim 1 : vector<16x128xf32>, i32 -> vector<16x128xf32>
    %115 = arith.mulf %112, %114 : vector<16x128xf32>
    %116 = arith.mulf %113, %79 : vector<16x128xf32>
    %117 = arith.addf %115, %116 : vector<16x128xf32>
    %c64_i32_38 = arith.constant 64 : i32
    %118 = tpu.dynamic_rotate %112 by %c64_i32_38 dim 1 : vector<16x128xf32>, i32 -> vector<16x128xf32>
    %119 = math.tanh %117 : vector<16x128xf32>
    %120 = arith.mulf %118, %119 : vector<16x128xf32>
    %121 = arith.truncf %120 : vector<16x128xf32> to vector<16x128xbf16>
    %cst_39 = arith.constant dense<0.000000e+00> : vector<16x256xf32>
    %122 = tpu.matmul %121, %10, %cst_39 {dimension_numbers = #tpu.dot_dimension_numbers<[1], [0], [0], [1], [0, 0, 1, 1], [], []>} : vector<16x128xbf16>, vector<128x256xbf16>, vector<16x256xf32> -> vector<16x256xf32>
    %123 = arith.addf %122, %104 : vector<16x256xf32>
    %124 = arith.addf %123, %14 : vector<16x256xf32>
    %125 = arith.mulf %124, %5 : vector<16x256xf32>
    %126 = math.tanh %125 : vector<16x256xf32>
    %127 = arith.mulf %126, %5 : vector<16x256xf32>
    %128 = arith.addf %127, %8 : vector<16x256xf32>
    %129 = vector.extract_strided_slice %128 {offsets = [0, 0], sizes = [16, 128], strides = [1, 1]} : vector<16x256xf32> to vector<16x128xf32>
    %130 = vector.extract_strided_slice %128 {offsets = [0, 128], sizes = [16, 128], strides = [1, 1]} : vector<16x256xf32> to vector<16x128xf32>
    %c64_i32_40 = arith.constant 64 : i32
    %131 = tpu.dynamic_rotate %130 by %c64_i32_40 dim 1 : vector<16x128xf32>, i32 -> vector<16x128xf32>
    %132 = arith.mulf %129, %131 : vector<16x128xf32>
    %133 = arith.mulf %130, %96 : vector<16x128xf32>
    %134 = arith.addf %132, %133 : vector<16x128xf32>
    %c64_i32_41 = arith.constant 64 : i32
    %135 = tpu.dynamic_rotate %129 by %c64_i32_41 dim 1 : vector<16x128xf32>, i32 -> vector<16x128xf32>
    %136 = math.tanh %134 : vector<16x128xf32>
    %137 = arith.mulf %135, %136 : vector<16x128xf32>
    %138 = arith.truncf %137 : vector<16x128xf32> to vector<16x128xbf16>
    %c656 = arith.constant 656 : index
    %c0_42 = arith.constant 0 : index
    %139 = vector.load %arg1[%c656, %c0_42] : memref<1264x256xbf16, #tpu.memory_space<vmem>>, vector<128x256xbf16>
    %cst_43 = arith.constant dense<0.000000e+00> : vector<16x256xf32>
    %140 = tpu.matmul %138, %139, %cst_43 {dimension_numbers = #tpu.dot_dimension_numbers<[1], [0], [0], [1], [0, 0, 1, 1], [], []>} : vector<16x128xbf16>, vector<128x256xbf16>, vector<16x256xf32> -> vector<16x256xf32>
    %141 = arith.addf %103, %140 : vector<16x256xf32>
    %cst_44 = arith.constant 0.000000e+00 : f32
    %142 = vector.broadcast %cst_44 : f32 to vector<16x256xf32>
    %143 = arith.maximumf %141, %142 : vector<16x256xf32>
    %144 = arith.truncf %143 : vector<16x256xf32> to vector<16x256xbf16>
    %c784 = arith.constant 784 : index
    %c0_45 = arith.constant 0 : index
    %145 = vector.load %arg1[%c784, %c0_45] : memref<1264x256xbf16, #tpu.memory_space<vmem>>, vector<256x256xbf16>
    %146 = vector.extract_strided_slice %145 {offsets = [0, 0], sizes = [256, 128], strides = [1, 1]} : vector<256x256xbf16> to vector<256x128xbf16>
    %cst_46 = arith.constant dense<0.000000e+00> : vector<16x128xf32>
    %147 = tpu.matmul %144, %146, %cst_46 {dimension_numbers = #tpu.dot_dimension_numbers<[1], [0], [0], [1], [0, 0, 1, 1], [], []>} : vector<16x256xbf16>, vector<256x128xbf16>, vector<16x128xf32> -> vector<16x128xf32>
    %c3 = arith.constant 3 : index
    %c0_47 = arith.constant 0 : index
    %148 = vector.load %arg2[%c3, %c0_47] : memref<8x256xf32, #tpu.memory_space<vmem>>, vector<1x256xf32>
    %149 = vector.extract_strided_slice %148 {offsets = [0, 0], sizes = [1, 128], strides = [1, 1]} : vector<1x256xf32> to vector<1x128xf32>
    %150 = vector.broadcast %149 : vector<1x128xf32> to vector<16x128xf32>
    %151 = arith.addf %147, %150 : vector<16x128xf32>
    %cst_48 = arith.constant 0.000000e+00 : f32
    %152 = vector.broadcast %cst_48 : f32 to vector<16x128xf32>
    %153 = arith.maximumf %151, %152 : vector<16x128xf32>
    %154 = arith.truncf %153 : vector<16x128xf32> to vector<16x128xbf16>
    %c1040 = arith.constant 1040 : index
    %c0_49 = arith.constant 0 : index
    %155 = vector.load %arg1[%c1040, %c0_49] : memref<1264x256xbf16, #tpu.memory_space<vmem>>, vector<128x256xbf16>
    %156 = vector.extract_strided_slice %155 {offsets = [0, 0], sizes = [128, 64], strides = [1, 1]} : vector<128x256xbf16> to vector<128x64xbf16>
    %cst_50 = arith.constant dense<0.000000e+00> : vector<16x64xf32>
    %157 = tpu.matmul %154, %156, %cst_50 {dimension_numbers = #tpu.dot_dimension_numbers<[1], [0], [0], [1], [0, 0, 1, 1], [], []>} : vector<16x128xbf16>, vector<128x64xbf16>, vector<16x64xf32> -> vector<16x64xf32>
    %c4 = arith.constant 4 : index
    %c0_51 = arith.constant 0 : index
    %158 = vector.load %arg2[%c4, %c0_51] : memref<8x256xf32, #tpu.memory_space<vmem>>, vector<1x256xf32>
    %159 = vector.extract_strided_slice %158 {offsets = [0, 0], sizes = [1, 64], strides = [1, 1]} : vector<1x256xf32> to vector<1x64xf32>
    %160 = vector.broadcast %159 : vector<1x64xf32> to vector<16x64xf32>
    %161 = arith.addf %157, %160 : vector<16x64xf32>
    %cst_52 = arith.constant 0.000000e+00 : f32
    %162 = vector.broadcast %cst_52 : f32 to vector<16x64xf32>
    %163 = arith.maximumf %161, %162 : vector<16x64xf32>
    %164 = arith.truncf %163 : vector<16x64xf32> to vector<16x64xbf16>
    %c1168 = arith.constant 1168 : index
    %c0_53 = arith.constant 0 : index
    %165 = vector.load %arg1[%c1168, %c0_53] : memref<1264x256xbf16, #tpu.memory_space<vmem>>, vector<64x256xbf16>
    %166 = vector.extract_strided_slice %165 {offsets = [0, 0], sizes = [64, 32], strides = [1, 1]} : vector<64x256xbf16> to vector<64x32xbf16>
    %cst_54 = arith.constant dense<0.000000e+00> : vector<16x32xf32>
    %167 = tpu.matmul %164, %166, %cst_54 {dimension_numbers = #tpu.dot_dimension_numbers<[1], [0], [0], [1], [0, 0, 1, 1], [], []>} : vector<16x64xbf16>, vector<64x32xbf16>, vector<16x32xf32> -> vector<16x32xf32>
    %c5 = arith.constant 5 : index
    %c0_55 = arith.constant 0 : index
    %168 = vector.load %arg2[%c5, %c0_55] : memref<8x256xf32, #tpu.memory_space<vmem>>, vector<1x256xf32>
    %169 = vector.extract_strided_slice %168 {offsets = [0, 0], sizes = [1, 32], strides = [1, 1]} : vector<1x256xf32> to vector<1x32xf32>
    %170 = vector.broadcast %169 : vector<1x32xf32> to vector<16x32xf32>
    %171 = arith.addf %167, %170 : vector<16x32xf32>
    %cst_56 = arith.constant 0.000000e+00 : f32
    %172 = vector.broadcast %cst_56 : f32 to vector<16x32xf32>
    %173 = arith.maximumf %171, %172 : vector<16x32xf32>
    %174 = arith.truncf %173 : vector<16x32xf32> to vector<16x32xbf16>
    %c1232 = arith.constant 1232 : index
    %c0_57 = arith.constant 0 : index
    %175 = vector.load %arg1[%c1232, %c0_57] : memref<1264x256xbf16, #tpu.memory_space<vmem>>, vector<32x256xbf16>
    %176 = vector.extract_strided_slice %175 {offsets = [0, 0], sizes = [32, 128], strides = [1, 1]} : vector<32x256xbf16> to vector<32x128xbf16>
    %cst_58 = arith.constant dense<0.000000e+00> : vector<16x128xf32>
    %177 = tpu.matmul %174, %176, %cst_58 {dimension_numbers = #tpu.dot_dimension_numbers<[1], [0], [0], [1], [0, 0, 1, 1], [], []>} : vector<16x32xbf16>, vector<32x128xbf16>, vector<16x128xf32> -> vector<16x128xf32>
    %c6 = arith.constant 6 : index
    %c0_59 = arith.constant 0 : index
    %178 = vector.load %arg2[%c6, %c0_59] : memref<8x256xf32, #tpu.memory_space<vmem>>, vector<1x256xf32>
    %179 = vector.extract_strided_slice %178 {offsets = [0, 0], sizes = [1, 128], strides = [1, 1]} : vector<1x256xf32> to vector<1x128xf32>
    %180 = vector.broadcast %179 : vector<1x128xf32> to vector<16x128xf32>
    %181 = arith.addf %177, %180 : vector<16x128xf32>
    %c0_60 = arith.constant 0 : index
    %c0_61 = arith.constant 0 : index
    %182 = vector.load %arg3[%c0_60, %c0_61] : memref<16x128xf32, #tpu.memory_space<vmem>>, vector<16x128xf32>
    tpu.vector_store %arg3[%c0_60, %c0_61], %181 {strides = array<i32>} : memref<16x128xf32, #tpu.memory_space<vmem>>, vector<16x128xf32>,
    return
  }
}

</mosaic_0001>

<bundles_post_ra>
// kernel: lstm_forward.1
= control target key start
LH: loop header
LB: loop body
LE: loop exit
PB: predicated region body
PF: predicated region fallthrough
CT: control target
= control target key end

     0   :  { %8 = vsyncpa [#allocation3], 0  ;;  %s2443_s15 = smov [#allocation2]   ;;  %s2444_s17 = smov 128   ;;  %s3020_s0 = inlined_call_operand.vmem [shape: bf16[48,16], index: 0, kind: input, shape index: {}]   ;;  %s3021_s1 = inlined_call_operand.hbm [shape: bf16[1264,256], index: 1, kind: input, shape index: {}]   ;;  %s3022_s2 = inlined_call_operand.vmem [shape: f32[8,256], index: 2, kind: input, shape index: {}]   ;;  %s3023_s3 = inlined_call_operand.vmem [shape: f32[16,128], index: 3, kind: output, shape index: {}]  }
   0x1   :  { %s15_s14 = sshll.u32 %s3021_s1, 4  ;;  %s17_s16 = sshll.u32 %s2443_s15, 4  ;;  %s16_s14 = int_to_ptr.hbm [resolvable:$true] %s15_s14  ;;  %s18_s16 = int_to_ptr.vmem [resolvable:$true] %s17_s16 }
   0x2   :  { %s2445_s18 = smov 8  }
   0x3   :  { %23 = dma.hbm_to_vmem [thread:$0]  %s16_s14, 20224, %s18_s16, [#allocation3], %s2444_s17, %s2444_s17, %s2445_s18  }
   0x4   :  { %2441 = dma.done.wait [#allocation3], 20224  }
   0x5   :  { %2442 = vsyncadd [#allocation3], 4294947072  ;;  %v1684_v0 = vld [vmem:[#allocation2] sm:$0xf]  ;;  %v2259_v1 = vld [vmem:[#allocation2 + $0x4] sm:$0xf0] }
   0x6   :  { %v2258_v2 = vld [vmem:[#allocation2 + $0x4] sm:$0xf]  ;;  %v1685_v3 = vor.u32 %v2259_v1, %v1684_v0  ;;  %v1686_v4 = vld [vmem:[#allocation2 + $0x8] sm:$0xf0]  ;;  %vm134_vm0 = vcmask 130048   ;;  %v2257_v29 = vld [vmem:[%s3020_s0 + $0x10] sm:$0xff] }
   0x7   :  { %v2255_v5 = vld [vmem:[%s3020_s0] sm:$0xff]  ;;  %v1689_v7 = vor.u32 %v2258_v2, %v1686_v4  ;;  %v1821_v8 = vld [vmem:[#allocation2 + $0x88] sm:$0xf0]  ;;  %v2222_v10 = vld [vmem:[#allocation2 + $0x84] sm:$0xf0]  ;;  %v2446_v57 = vmov 0  }
   0x8   :  { %v2221_v6 = vld [vmem:[#allocation2 + $0x84] sm:$0xf]  ;;  %v1819_v9 = vld [vmem:[#allocation2 + $0x80] sm:$0xf]  ;;  %151 = vmatpush.bf16.msra.mxu0 %v1685_v3  ;;  %v1811_v13 = vld [vmem:[#allocation2 + $0x70] sm:$0xf]  ;;  %2338 = vmatpush.bf16.msra.mxu3 %v1685_v3 }
   0x9   :  { %v2475_v11 = vor.u32 %v2221_v6, %v1821_v8  ;;  %v2477_v12 = vor.u32 %v2222_v10, %v1819_v9  ;;  %v2220_v14 = vld [vmem:[#allocation2 + $0x74] sm:$0xf0]  ;;  %v2219_v15 = vld [vmem:[#allocation2 + $0x74] sm:$0xf]  ;;  %175 = vmatpush.bf16.msra.mxu1 %v1689_v7  ;;  %v1813_v16 = vld [vmem:[#allocation2 + $0x78] sm:$0xf0]  ;;  %v31_v9 = vlaneseq }
   0xa   :  { %v2481_v17 = vor.u32 %v2220_v14, %v1811_v13  ;;  %v2483_v18 = vor.u32 %v2219_v15, %v1813_v16  ;;  %v1803_v19 = vld [vmem:[#allocation2 + $0x60] sm:$0xf]  ;;  %v2218_v20 = vld [vmem:[#allocation2 + $0x64] sm:$0xf0]  ;;  %v2217_v21 = vld [vmem:[#allocation2 + $0x64] sm:$0xf] }
   0xb   :  { %1690 = vmatmul.msk.bf16.vlgmr.msra.gmra.mxu0 %vm134_vm0, %v2255_v5  ;;  %v1805_v22 = vld [vmem:[#allocation2 + $0x68] sm:$0xf0]  ;;  %v2489_v23 = vor.u32 %v2218_v20, %v1803_v19  ;;  %v1795_v25 = vld [vmem:[#allocation2 + $0x50] sm:$0xf]  ;;  %v2216_v26 = vld [vmem:[#allocation2 + $0x54] sm:$0xf0]  ;;  %1692 = vmatmul.msk.bf16.vlgmr.msra.gmra.mxu3 %vm134_vm0, %v2257_v29 }
   0xc   :  { %387 = vmatpush.bf16.msrb.mxu0 %v2477_v12  ;;  %1693 = vmatmul.msk.bf16.vlgmr.msra.gmra.mxu1 %vm134_vm0, %v2255_v5  ;;  %v2491_v24 = vor.u32 %v2217_v21, %v1805_v22  ;;  %v2215_v27 = vld [vmem:[#allocation2 + $0x54] sm:$0xf]  ;;  %v1797_v28 = vld [vmem:[#allocation2 + $0x58] sm:$0xf0]  ;;  %v2498_v30 = vor.u32 %v2216_v26, %v1795_v25  ;;  %v1787_v31 = vld [vmem:[#allocation2 + $0x40] sm:$0xf] }
   0xd   :  { %401 = vmatpush.bf16.msrb.mxu1 %v2475_v11  ;;  %v2500_v32 = vor.u32 %v2215_v27, %v1797_v28  ;;  %v2214_v33 = vld [vmem:[#allocation2 + $0x44] sm:$0xf0]  ;;  %v2213_v34 = vld [vmem:[#allocation2 + $0x44] sm:$0xf]  ;;  %v1789_v35 = vld [vmem:[#allocation2 + $0x48] sm:$0xf0] }
   0xe   :  { %v2256_v36 = vld [vmem:[%s3020_s0 + $0x8] sm:$0xff]  ;;  %v2507_v37 = vor.u32 %v2214_v33, %v1787_v31  ;;  %v1779_v38 = vld [vmem:[#allocation2 + $0x30] sm:$0xf]  ;;  %v2510_v39 = vor.u32 %v2213_v34, %v1789_v35  ;;  %v2212_v40 = vld [vmem:[#allocation2 + $0x34] sm:$0xf0]  ;;  %v32_v16 = vand.u32 127, %v31_v9 }
   0xf   :  { %v2211_v41 = vld [vmem:[#allocation2 + $0x34] sm:$0xf]  ;;  %v1781_v42 = vld [vmem:[#allocation2 + $0x38] sm:$0xf0]  ;;  %v2513_v43 = vor.u32 %v2212_v40, %v1779_v38  ;;  %v1771_v44 = vld [vmem:[#allocation2 + $0x20] sm:$0xf] }
  0x10   :  { %388 = vmatpush.bf16.msrb.mxu0 %v2481_v17  ;;  %v2516_v45 = vor.u32 %v2211_v41, %v1781_v42  ;;  %v2210_v46 = vld [vmem:[#allocation2 + $0x24] sm:$0xf0]  ;;  %v2209_v47 = vld [vmem:[#allocation2 + $0x24] sm:$0xf]  ;;  %v1773_v48 = vld [vmem:[#allocation2 + $0x28] sm:$0xf0] }
  0x11   :  { %402 = vmatpush.bf16.msrb.mxu1 %v2483_v18  ;;  %v2521_v49 = vor.u32 %v2210_v46, %v1771_v44  ;;  %v1763_v50 = vld [vmem:[#allocation2 + $0x10] sm:$0xf]  ;;  %v2524_v51 = vor.u32 %v2209_v47, %v1773_v48  ;;  %v2208_v52 = vld [vmem:[#allocation2 + $0x14] sm:$0xf0]  ;;  %v2207_v53 = vld [vmem:[#allocation2 + $0x14] sm:$0xf] }
  0x12   :  { %v1765_v54 = vld [vmem:[#allocation2 + $0x18] sm:$0xf0]  ;;  %v2527_v55 = vor.u32 %v2208_v52, %v1763_v50  ;;  %v103_v62 = vld [vmem:[%s3022_s2] ss:$8 sm:$0x3]  ;;  %v2561_v21 = vadd.s32 128, %v32_v16 }
  0x13   :  { %v2530_v56 = vor.u32 %v2207_v53, %v1765_v54  ;;  %v2542_v63 = vperm.slane %v103_v62, 1  ;;  %v2554_v6 = vperm.slane %v103_v62, 0  ;;  %v1755_v26 = vld [vmem:[#allocation2 + $0x180] sm:$0xf]  ;;  %v2254_v27 = vld [vmem:[#allocation2 + $0x184] sm:$0xf0] }
  0x14   :  { %389 = vmatpush.bf16.msrb.mxu0 %v2489_v23  ;;  %v2253_v28 = vld [vmem:[#allocation2 + $0x184] sm:$0xf]  ;;  %v2566_v31 = vor.u32 %v2254_v27, %v1755_v26  ;;  %v1757_v33 = vld [vmem:[#allocation2 + $0x188] sm:$0xf0]  ;;  %v1747_v34 = vld [vmem:[#allocation2 + $0x170] sm:$0xf] }
  0x15   :  { %403 = vmatpush.bf16.msrb.mxu1 %v2491_v24  ;;  %v2252_v35 = vld [vmem:[#allocation2 + $0x174] sm:$0xf0]  ;;  %v2568_v40 = vor.u32 %v2253_v28, %v1757_v33  ;;  %v2251_v41 = vld [vmem:[#allocation2 + $0x174] sm:$0xf]  ;;  %v1749_v42 = vld [vmem:[#allocation2 + $0x178] sm:$0xf0] }
  0x16   :  { %279 = vmatpush.bf16.msra.mxu2 %v2566_v31  ;;  %v2571_v46 = vor.u32 %v2252_v35, %v1747_v34  ;;  %vm35_vm1 = vcmp.ge.s32.totalorder %v2561_v21, 192  ;;  %v2575_v47 = vor.u32 %v2251_v41, %v1749_v42  ;;  %v1739_v48 = vld [vmem:[#allocation2 + $0x160] sm:$0xf]  ;;  %v2250_v50 = vld [vmem:[#allocation2 + $0x164] sm:$0xf0]  ;;  %s2447_s25 = smov 64  }
  0x17   :  { %293 = vmatpush.bf16.msrb.mxu3 %v2568_v40  ;;  %v2249_v53 = vld [vmem:[#allocation2 + $0x164] sm:$0xf]  ;;  %v1741_v54 = vld [vmem:[#allocation2 + $0x168] sm:$0xf0]  ;;  %v2448_v62 = vmov 0.5   ;;  %vm1602_vm2 = vcmask 523264  }
  0x18   :  { %390 = vmatpush.bf16.msrb.mxu0 %v2498_v30  ;;  %v2246_v26 = vld [vmem:[#allocation2 + $0x144] sm:$0xf0]  ;;  %v2245_v28 = vld [vmem:[#allocation2 + $0x144] sm:$0xf]  ;;  %v1725_v33 = vld [vmem:[#allocation2 + $0x148] sm:$0xf0] }
  0x19   :  { %404 = vmatpush.bf16.msrb.mxu1 %v2500_v32  ;;  %v1715_v41 = vld [vmem:[#allocation2 + $0x130] sm:$0xf]  ;;  %v2244_v42 = vld [vmem:[#allocation2 + $0x134] sm:$0xf0]  ;;  %vm1644_vm3 = vcmask 261120  }
  0x1a   :  { %280 = vmatpush.bf16.msra.mxu2 %v2571_v46 }
  0x1b   :  { %1691 = vmatmul.msk.bf16.gmra.mxu0 %vm134_vm0, %v2256_v36  ;;  %294 = vmatpush.bf16.msrb.mxu3 %v2575_v47 }
  0x1c   :  { %391 = vmatpush.bf16.msrb.mxu0 %v2507_v37  ;;  %1694 = vmatmul.msk.bf16.gmra.mxu1 %vm134_vm0, %v2256_v36 }
  0x1d   :  { %405 = vmatpush.bf16.msrb.mxu1 %v2510_v39 }
  0x20   :  { %392 = vmatpush.bf16.msrb.mxu0 %v2513_v43 }
  0x21   :  { %406 = vmatpush.bf16.msrb.mxu1 %v2516_v45 }
  0x24   :  { %393 = vmatpush.bf16.msrb.mxu0 %v2521_v49 }
  0x25   :  { %407 = vmatpush.bf16.msrb.mxu1 %v2524_v51 }
  0x28   :  { %394 = vmatpush.bf16.msrb.mxu0 %v2527_v55 }
  0x29   :  { %408 = vmatpush.bf16.msrb.mxu1 %v2530_v56 }
  0x2b   :  { %395 = vmatmul.bf16.vlgmr.msrb.gmra.mxu0 %v2446_v57 }
  0x2c   :  { %1695 = vmatmul.msk.bf16.gmra.mxu1 %vm134_vm0, %v2257_v29 }
  0x3c   :  { %409 = vmatmul.bf16.vlgmr.msrb.gmra.mxu1 %v2446_v57 }
  0x88   :  { %v153_v58 = vpop.f32.mrf.mxu0 }
  0x89   :  { %v177_v59 = vpop.f32.mrf.mxu1  ;;  %v154_v7 = vadd.f32 %v153_v58, %v2554_v6 }
  0x8a   :  { %v178_v58 = vadd.f32 %v177_v59, %v2542_v63  ;;  %v2248_v59 = vld [vmem:[#allocation2 + $0x154] sm:$0xf0] }
  0x90   :  { %v155_v60 = vpop.f32.mrf.mxu0 }
  0x91   :  { %v2537_v61 = vpop.f32.mrf.mxu1  ;;  %v156_v19 = vadd.f32 %v155_v60, %v2554_v6  ;;  %v2583_v60 = vor.u32 %v2250_v50, %v1739_v48  ;;  %v2243_v48 = vld [vmem:[#allocation2 + $0x134] sm:$0xf]  ;;  %v1717_v50 = vld [vmem:[#allocation2 + $0x138] sm:$0xf0] }
  0x92   :  { %v180_v34 = vadd.f32 %v2537_v61, %v2542_v63 }
  0x93   :  { %281 = vmatpush.bf16.msra.mxu2 %v2583_v60 }
  0x98   :  { %v2544_v0 = vpop.f32.mrf.mxu0 }
  0x99   :  { %3041 = vst [vmem:[#allocation5_spill] sm:$0xff] %v2544_v0  ;;  %v182_v1 = vpop.f32.mrf.mxu1  ;;  %v2223_v0 = vld [vmem:[#allocation2 + $0x94] sm:$0xf] }
  0x9a   :  { %v2547_v2 = vadd.f32 %v182_v1, %v2542_v63  ;;  %v2587_v1 = vsel %vm35_vm1, 1.0, %v2448_v62 }
  0x9c   :  { %3042 = vst [vmem:[#allocation6_spill] sm:$0xff] %v2547_v2 }
  0xa0   :  { %v2549_v3 = vpop.f32.mrf.mxu0 }
  0xa1   :  { %3043 = vst [vmem:[#allocation7_spill] sm:$0xff] %v2549_v3  ;;  %v184_v4 = vpop.f32.mrf.mxu1  ;;  %v2224_v3 = vld [vmem:[#allocation2 + $0x94] sm:$0xf0] }
  0xa2   :  { %v2552_v5 = vadd.f32 %v184_v4, %v2542_v63 }
  0xa4   :  { %3044 = vst [vmem:[#allocation8_spill] sm:$0xff] %v2552_v5  ;;  %v1827_v5 = vld [vmem:[#allocation2 + $0x90] sm:$0xf] }
  0xa8   :  { %v396_v8 = vpop.f32.mrf.mxu0 }
  0xa9   :  { %v187_v10 = vpop.f32.mrf.mxu1  ;;  %v415_v13 = vadd.f32 %v396_v8, %v154_v7  ;;  %v2590_v7 = vor.u32 %v2249_v53, %v1741_v54  ;;  %v1731_v8 = vld [vmem:[#allocation2 + $0x150] sm:$0xf]  ;;  %v2617_v54 = vor.u32 %v2244_v42, %v1715_v41  ;;  %v1883_v41 = vld [vmem:[#allocation2 + $0x100] sm:$0xf]  ;;  %v2238_v42 = vld [vmem:[#allocation2 + $0x104] sm:$0xf0] }
  0xaa   :  { %v2558_v14 = vadd.f32 %v187_v10, %v2542_v63  ;;  %v2247_v10 = vld [vmem:[#allocation2 + $0x154] sm:$0xf] }
  0xab   :  { %v419_v15 = vmul.f32 0.5, %v415_v13  ;;  %v1733_v13 = vld [vmem:[#allocation2 + $0x158] sm:$0xf0]  ;;  %295 = vmatpush.bf16.msrb.mxu3 %v2590_v7 }
  0xac   :  { %3045 = vst [vmem:[#allocation9_spill] sm:$0xff] %v2558_v14  ;;  %v1835_v14 = vld [vmem:[#allocation2 + $0xa0] sm:$0xf] }
  0xad   :  { %2345 = vtanh.f32 %v419_v15 }
  0xb0   :  { %v398_v20 = vpop.f32.mrf.mxu0 }
  0xb1   :  { %v189_v22 = vpop.f32.mrf.mxu1  ;;  %v417_v25 = vadd.f32 %v398_v20, %v156_v19  ;;  %v2594_v20 = vor.u32 %v2248_v59, %v1731_v8 }
  0xb2   :  { %v2564_v29 = vadd.f32 %v189_v22, %v2542_v63  ;;  %v2597_v22 = vor.u32 %v2247_v10, %v1733_v13  ;;  %v2614_v63 = vsel %vm35_vm1, 0.0, %v2448_v62  ;;  %v2242_v10 = vld [vmem:[#allocation2 + $0x124] sm:$0xf0]  ;;  %v2241_v13 = vld [vmem:[#allocation2 + $0x124] sm:$0xf] }
  0xb3   :  { %v2346_v36 = vpop.eup %2345  ;;  %v421_v38 = vmul.f32 0.5, %v417_v25  ;;  %v1723_v25 = vld [vmem:[#allocation2 + $0x140] sm:$0xf]  ;;  %282 = vmatpush.bf16.msra.mxu2 %v2594_v20 }
  0xb4   :  { %3046 = vst [vmem:[#allocation10_spill] sm:$0xff] %v2564_v29  ;;  %v427_v44 = vmul.f32 0.5, %v2346_v36  ;;  %v2606_v35 = vor.u32 %v2246_v26, %v1723_v25  ;;  %296 = vmatpush.bf16.msrb.mxu3 %v2597_v22  ;;  %v2240_v25 = vld [vmem:[#allocation2 + $0x114] sm:$0xf0] }
  0xb5   :  { %2347 = vtanh.f32 %v421_v38  ;;  %v2609_v38 = vor.u32 %v2245_v28, %v1725_v33  ;;  %v2239_v28 = vld [vmem:[#allocation2 + $0x114] sm:$0xf]  ;;  %v1701_v33 = vld [vmem:[#allocation2 + $0x118] sm:$0xf0] }
  0xb6   :  { %v2577_v52 = vadd.f32 0.5, %v427_v44 }
  0xb7   :  { %283 = vmatpush.bf16.msra.mxu2 %v2606_v35 }
  0xb8   :  { %445 = vrot.lane.b32.xlu1 %v2577_v52, %s2447_s25  ;;  %297 = vmatpush.bf16.msrb.mxu3 %v2609_v38 }
  0xb9   :  { %v410_v4 = vpop.f32.mrf.mxu1 }
  0xba   :  { %v416_v9 = vadd.f32 %v410_v4, %v178_v58  ;;  %v2621_v4 = vor.u32 %v2243_v48, %v1717_v50  ;;  %v2648_v48 = vor.u32 %v2238_v42, %v1883_v41  ;;  %v1885_v50 = vld [vmem:[#allocation2 + $0x108] sm:$0xf0]  ;;  %v1859_v41 = vld [vmem:[#allocation2 + $0xd0] sm:$0xf]  ;;  %v2232_v42 = vld [vmem:[#allocation2 + $0xd4] sm:$0xf0] }
  0xbb   :  { %v2348_v15 = vpop.eup %2347  ;;  %284 = vmatpush.bf16.msra.mxu2 %v2617_v54 }
  0xbc   :  { %v429_v16 = vmul.f32 0.5, %v2348_v15  ;;  %v420_v19 = vmul.f32 %v416_v9, %v2587_v1  ;;  %298 = vmatpush.bf16.msrb.mxu3 %v2621_v4  ;;  %v1707_v9 = vld [vmem:[#allocation2 + $0x120] sm:$0xf] }
  0xbd   :  { %v2636_v15 = vor.u32 %v2242_v10, %v1707_v9 }
  0xbe   :  { %v2599_v27 = vadd.f32 0.5, %v429_v16  ;;  %2349 = vtanh.f32 %v420_v19  ;;  %v1709_v16 = vld [vmem:[#allocation2 + $0x128] sm:$0xf0]  ;;  %v1699_v19 = vld [vmem:[#allocation2 + $0x110] sm:$0xf] }
  0xbf   :  { %v2638_v26 = vor.u32 %v2241_v13, %v1709_v16  ;;  %285 = vmatpush.bf16.msra.mxu2 %v2636_v15  ;;  %v1867_v13 = vld [vmem:[#allocation2 + $0xe0] sm:$0xf]  ;;  %v2234_v16 = vld [vmem:[#allocation2 + $0xe4] sm:$0xf0] }
  0xc0   :  { %447 = vrot.lane.b32.xlu1 %v2599_v27, %s2447_s25 }
  0xc1   :  { %v412_v36 = vpop.f32.mrf.mxu1  ;;  %299 = vmatpush.bf16.msrb.mxu3 %v2638_v26 }
  0xc2   :  { %v418_v44 = vadd.f32 %v412_v36, %v180_v34  ;;  %v2641_v34 = vor.u32 %v2240_v25, %v1699_v19  ;;  %v2644_v36 = vor.u32 %v2239_v28, %v1701_v33  ;;  %v2233_v19 = vld [vmem:[#allocation2 + $0xe4] sm:$0xf]  ;;  %v2662_v25 = vor.u32 %v2234_v16, %v1867_v13  ;;  %v1869_v28 = vld [vmem:[#allocation2 + $0xe8] sm:$0xf0] }
  0xc3   :  { %v2664_v33 = vor.u32 %v2233_v19, %v1869_v28  ;;  %v1853_v16 = vld [vmem:[#allocation2 + $0xc8] sm:$0xf0]  ;;  %v1843_v28 = vld [vmem:[#allocation2 + $0xb0] sm:$0xf] }
  0xc4   :  { %v2350_v53 = vpop.eup %2349  ;;  %v422_v61 = vmul.f32 %v418_v44, %v2587_v1  ;;  %286 = vmatpush.bf16.msra.mxu2 %v2641_v34  ;;  %v2237_v44 = vld [vmem:[#allocation2 + $0x104] sm:$0xf]  ;;  %3048 = vst [vmem:[#allocation12_spill] sm:$0xff] %v2662_v25 }
  0xc5   :  { %v428_v58 = vmul.f32 %v2350_v53, %v2587_v1  ;;  %300 = vmatpush.bf16.msrb.mxu3 %v2644_v36  ;;  %v1875_v53 = vld [vmem:[#allocation2 + $0xf0] sm:$0xf]  ;;  %3049 = vst [vmem:[#allocation13_spill] sm:$0xff] %v2664_v33 }
  0xc6   :  { %2351 = vtanh.f32 %v422_v61  ;;  %v2236_v61 = vld [vmem:[#allocation2 + $0xf4] sm:$0xf0] }
  0xc7   :  { %v2624_v8 = vadd.f32 %v428_v58, %v2614_v63  ;;  %v2650_v58 = vor.u32 %v2237_v44, %v1885_v50  ;;  %v2653_v9 = vor.u32 %v2236_v61, %v1875_v53  ;;  %287 = vmatmul.bf16.vlgmr.msra.gmra.mxu2 %v2446_v57  ;;  %v2231_v44 = vld [vmem:[#allocation2 + $0xd4] sm:$0xf]  ;;  %v1861_v50 = vld [vmem:[#allocation2 + $0xd8] sm:$0xf0]  ;;  %v1851_v61 = vld [vmem:[#allocation2 + $0xc0] sm:$0xf] }
  0xc8   :  { %534 = vmatpush.bf16.msrb.mxu2 %v2648_v48  ;;  %301 = vmatmul.bf16.vlgmr.msrb.gmra.mxu3 %v2446_v57  ;;  %v2668_v57 = vor.u32 %v2232_v42, %v1859_v41  ;;  %v2670_v53 = vor.u32 %v2231_v44, %v1861_v50  ;;  %v2228_v41 = vld [vmem:[#allocation2 + $0xb4] sm:$0xf0]  ;;  %v2227_v42 = vld [vmem:[#allocation2 + $0xb4] sm:$0xf]  ;;  %v1845_v50 = vld [vmem:[#allocation2 + $0xb8] sm:$0xf0] }
  0xc9   :  { %435 = vrot.lane.b32.xlu0 %v2624_v8, %s2447_s25  ;;  %548 = vmatpush.bf16.msra.mxu3 %v2650_v58  ;;  %v2680_v44 = vor.u32 %v2228_v41, %v1843_v28  ;;  %v2682_v29 = vor.u32 %v2227_v42, %v1845_v50  ;;  %v1829_v28 = vld [vmem:[#allocation2 + $0x98] sm:$0xf0]  ;;  %v2691_v41 = vor.u32 %v2224_v3, %v1827_v5  ;;  %v441_v5 = vmul.f32 0.0, %v2624_v8 }
  0xca   :  { %3050 = vst [vmem:[#allocation14_spill] sm:$0xff] %v2668_v57  ;;  %v2694_v42 = vor.u32 %v2223_v0, %v1829_v28 }
  0xcb   :  { %3051 = vst [vmem:[#allocation15_spill] sm:$0xff] %v2670_v53 }
  0xcc   :  { %v2352_v21 = vpop.eup %2351  ;;  %535 = vmatpush.bf16.msrb.mxu2 %v2653_v9  ;;  %3054 = vst [vmem:[#allocation18_spill] sm:$0xff] %v2680_v44 }
  0xcd   :  { %v430_v62 = vmul.f32 %v2352_v21, %v2587_v1  ;;  %v2235_v21 = vld [vmem:[#allocation2 + $0xf4] sm:$0xf]  ;;  %3055 = vst [vmem:[#allocation19_spill] sm:$0xff] %v2682_v29 }
  0xce   :  { %3058 = vst [vmem:[#allocation22_spill] sm:$0xff] %v2691_v41 }
  0xcf   :  { %v2632_v59 = vadd.f32 %v430_v62, %v2614_v63  ;;  %v1877_v62 = vld [vmem:[#allocation2 + $0xf8] sm:$0xf0]  ;;  %3059 = vst [vmem:[#allocation23_spill] sm:$0xff] %v2694_v42 }
  0xd0   :  { %v2656_v10 = vor.u32 %v2235_v21, %v1877_v62  ;;  %536 = vmatpush.bf16.msrb.mxu2 %v2662_v25  ;;  %v2230_v21 = vld [vmem:[#allocation2 + $0xc4] sm:$0xf0]  ;;  %v2229_v62 = vld [vmem:[#allocation2 + $0xc4] sm:$0xf] }
  0xd1   :  { %437 = vrot.lane.b32.xlu0 %v2632_v59, %s2447_s25  ;;  %v2674_v13 = vor.u32 %v2230_v21, %v1851_v61  ;;  %v2676_v19 = vor.u32 %v2229_v62, %v1853_v16  ;;  %v2226_v61 = vld [vmem:[#allocation2 + $0xa4] sm:$0xf0]  ;;  %v2225_v21 = vld [vmem:[#allocation2 + $0xa4] sm:$0xf]  ;;  %v1837_v16 = vld [vmem:[#allocation2 + $0xa8] sm:$0xf0] }
  0xd2   :  { %3047 = vst [vmem:[#allocation11_spill] sm:$0xff] %v2656_v10  ;;  %549 = vmatpush.bf16.msra.mxu3 %v2656_v10  ;;  %v2686_v62 = vor.u32 %v2226_v61, %v1835_v14  ;;  %v2688_v2 = vor.u32 %v2225_v21, %v1837_v16  ;;  %v442_v16 = vmul.f32 0.0, %v2632_v59 }
  0xd3   :  { %3052 = vst [vmem:[#allocation16_spill] sm:$0xff] %v2674_v13 }
  0xd4   :  { %537 = vmatpush.bf16.msrb.mxu2 %v2668_v57  ;;  %3053 = vst [vmem:[#allocation17_spill] sm:$0xff] %v2676_v19 }
  0xd5   :  { %3056 = vst [vmem:[#allocation20_spill] sm:$0xff] %v2686_v62 }
  0xd6   :  { %550 = vmatpush.bf16.msra.mxu3 %v2664_v33  ;;  %3057 = vst [vmem:[#allocation21_spill] sm:$0xff] %v2688_v2 }
  0xd8   :  { %538 = vmatpush.bf16.msrb.mxu2 %v2674_v13 }
  0xda   :  { %551 = vmatpush.bf16.msra.mxu3 %v2670_v53 }
  0xdc   :  { %539 = vmatpush.bf16.msrb.mxu2 %v2680_v44 }
  0xde   :  { %552 = vmatpush.bf16.msra.mxu3 %v2676_v19 }
  0xe0   :  { %540 = vmatpush.bf16.msrb.mxu2 %v2686_v62 }
  0xe2   :  { %553 = vmatpush.bf16.msra.mxu3 %v2682_v29 }
  0xe4   :  { %541 = vmatpush.bf16.msrb.mxu2 %v2691_v41 }
  0xe6   :  { %554 = vmatpush.bf16.msra.mxu3 %v2688_v2 }
  0xe8   :  { %729 = vmatpush.bf16.msra.mxu2 %v2566_v31 }
  0xea   :  { %555 = vmatpush.bf16.msra.mxu3 %v2694_v42 }
  0xec   :  { %730 = vmatpush.bf16.msra.mxu2 %v2571_v46 }
  0xee   :  { %743 = vmatpush.bf16.msrb.mxu3 %v2568_v40 }
  0xf0   :  { %731 = vmatpush.bf16.msra.mxu2 %v2583_v60 }
  0xf2   :  { %744 = vmatpush.bf16.msrb.mxu3 %v2575_v47 }
  0xf4   :  { %732 = vmatpush.bf16.msra.mxu2 %v2594_v20 }
  0xf6   :  { %745 = vmatpush.bf16.msrb.mxu3 %v2590_v7 }
  0xf8   :  { %733 = vmatpush.bf16.msra.mxu2 %v2606_v35 }
  0xfa   :  { %746 = vmatpush.bf16.msrb.mxu3 %v2597_v22 }
  0xfc   :  { %734 = vmatpush.bf16.msra.mxu2 %v2617_v54 }
  0xfe   :  { %747 = vmatpush.bf16.msrb.mxu3 %v2609_v38 }
 0x100   :  { %735 = vmatpush.bf16.msra.mxu2 %v2636_v15 }
 0x102   :  { %748 = vmatpush.bf16.msrb.mxu3 %v2621_v4 }
 0x104   :  { %736 = vmatpush.bf16.msra.mxu2 %v2641_v34 }
 0x106   :  { %749 = vmatpush.bf16.msrb.mxu3 %v2638_v26 }
 0x10a   :  { %750 = vmatpush.bf16.msrb.mxu3 %v2644_v36 }
 0x12a   :  { %v446_v61 = vpop.permute.xlu1 %445 }
 0x132   :  { %v448_v28 = vpop.permute.xlu1 %447 }
 0x13b   :  { %v436_v3 = vpop.permute.xlu0 %435 }
 0x13c   :  { %v439_v0 = vmul.f32 %v436_v3, %v2577_v52 }
 0x13e   :  { %v2709_v14 = vadd.f32 %v441_v5, %v439_v0  ;;  %v2744_v5 = vpop.f32.mrf.mxu3 }
 0x13f   :  { %3060 = vst [vmem:[#allocation24_spill] sm:$0xff] %v2744_v5  ;;  %v1941_v5 = vld [vmem:[#allocation2 + $0x1f8] sm:$0xf0] }
 0x140   :  { %2353 = vtanh.f32 %v2709_v14 }
 0x143   :  { %v438_v50 = vpop.permute.xlu0 %437 }
 0x144   :  { %v440_v21 = vmul.f32 %v438_v50, %v2599_v27 }
 0x146   :  { %v2716_v52 = vadd.f32 %v442_v16, %v440_v21  ;;  %v2354_v8 = vpop.eup %2353  ;;  %v2746_v50 = vpop.f32.mrf.mxu3 }
 0x147   :  { %v451_v59 = vmul.f32 %v2354_v8, %v446_v61  ;;  %3061 = vst [vmem:[#allocation25_spill] sm:$0xff] %v2746_v50 }
 0x148   :  { %2355 = vtanh.f32 %v2716_v52 }
 0x14a   :  { %v288_v21 = vpop.f32.mrf.mxu2 }
 0x14e   :  { %v2356_v27 = vpop.eup %2355  ;;  %v302_v61 = vpop.f32.mrf.mxu3 }
 0x14f   :  { %v452_v3 = vmul.f32 %v2356_v27, %v448_v28  ;;  %v1669_v27 = vld [vmem:[%s3022_s2 + $0x1] ss:$8 sm:$0x3] }
 0x150   :  { %v1947_v28 = vld [vmem:[#allocation2 + $0x200] sm:$0xf] }
 0x151   :  { %v2724_v0 = vpack.c.bf16 %v452_v3, %v451_v59  ;;  %v2275_v59 = vld [vmem:[#allocation2 + $0x204] sm:$0xf0]  ;;  %v2274_v3 = vld [vmem:[#allocation2 + $0x204] sm:$0xf] }
 0x152   :  { %v290_v8 = vpop.f32.mrf.mxu2 }
 0x153   :  { %542 = vmatmul.bf16.vlgmr.msrb.gmra.mxu2 %v2724_v0  ;;  %556 = vmatmul.bf16.vlgmr.msra.gmra.mxu3 %v2724_v0 }
 0x154   :  { %824 = vmatpush.bf16.msrb.mxu2 %v2648_v48  ;;  %838 = vmatpush.bf16.msra.mxu3 %v2650_v58 }
 0x156   :  { %v304_v16 = vpop.f32.mrf.mxu3 }
 0x158   :  { %825 = vmatpush.bf16.msrb.mxu2 %v2653_v9  ;;  %839 = vmatpush.bf16.msra.mxu3 %v2656_v10 }
 0x15c   :  { %826 = vmatpush.bf16.msrb.mxu2 %v2662_v25  ;;  %840 = vmatpush.bf16.msra.mxu3 %v2664_v33 }
 0x160   :  { %827 = vmatpush.bf16.msrb.mxu2 %v2668_v57  ;;  %841 = vmatpush.bf16.msra.mxu3 %v2670_v53 }
 0x164   :  { %828 = vmatpush.bf16.msrb.mxu2 %v2674_v13  ;;  %842 = vmatpush.bf16.msra.mxu3 %v2676_v19  ;;  %v2751_v19 = vperm.slane %v1669_v27, 0  ;;  %v2753_v13 = vperm.slane %v1669_v27, 1 }
 0x166   :  { %3062 = vst [vmem:[#allocation26_spill] sm:$0xff] %v2751_v19 }
 0x167   :  { %3063 = vst [vmem:[#allocation27_spill] sm:$0xff] %v2753_v13 }
 0x168   :  { %829 = vmatpush.bf16.msrb.mxu2 %v2680_v44  ;;  %843 = vmatpush.bf16.msra.mxu3 %v2682_v29  ;;  %v2273_v29 = vld [vmem:[#allocation2 + $0x1f4] sm:$0xf0]  ;;  %v2272_v44 = vld [vmem:[#allocation2 + $0x1f4] sm:$0xf] }
 0x169   :  { %v1944_v53 = vor.u32 %v2272_v44, %v1941_v5 }
 0x16c   :  { %830 = vmatpush.bf16.msrb.mxu2 %v2686_v62  ;;  %844 = vmatpush.bf16.msra.mxu3 %v2688_v2  ;;  %v1948_v2 = vor.u32 %v2275_v59, %v1947_v28  ;;  %v1949_v62 = vld [vmem:[#allocation2 + $0x208] sm:$0xf0] }
 0x16e   :  { %697 = vmatpush.bf16.msra.mxu0 %v1948_v2 }
 0x170   :  { %831 = vmatpush.bf16.msrb.mxu2 %v2691_v41  ;;  %845 = vmatpush.bf16.msra.mxu3 %v2694_v42  ;;  %v1939_v41 = vld [vmem:[#allocation2 + $0x1f0] sm:$0xf]  ;;  %v1952_v42 = vor.u32 %v2274_v3, %v1949_v62 }
 0x171   :  { %v1940_v50 = vor.u32 %v2273_v29, %v1939_v41 }
 0x172   :  { %711 = vmatpush.bf16.msra.mxu1 %v1952_v42 }
 0x173   :  { %698 = vmatpush.bf16.msra.mxu0 %v1940_v50 }
 0x176   :  { %712 = vmatpush.bf16.msra.mxu1 %v1944_v53 }
 0x1d6   :  { %v543_v57 = vpop.f32.mrf.mxu2  ;;  %v557_v33 = vpop.f32.mrf.mxu3 }
 0x1d7   :  { %v544_v25 = vadd.f32 %v543_v57, %v288_v21  ;;  %v558_v10 = vadd.f32 %v557_v33, %v302_v61 }
 0x1d9   :  { %v562_v28 = vadd.f32 %v544_v25, %v2751_v19  ;;  %v563_v59 = vadd.f32 %v558_v10, %v2753_v13 }
 0x1db   :  { %v566_v62 = vmul.f32 0.5, %v562_v28  ;;  %v567_v2 = vmul.f32 %v563_v59, %v2587_v1 }
 0x1dd   :  { %2357 = vtanh.f32 %v566_v62 }
 0x1de   :  { %2359 = vtanh.f32 %v567_v2  ;;  %v545_v29 = vpop.f32.mrf.mxu2  ;;  %v559_v41 = vpop.f32.mrf.mxu3  ;;  %v1931_v2 = vld [vmem:[#allocation2 + $0x1e0] sm:$0xf] }
 0x1df   :  { %v546_v27 = vadd.f32 %v545_v29, %v290_v8  ;;  %v560_v42 = vadd.f32 %v559_v41, %v304_v16  ;;  %v2271_v29 = vld [vmem:[#allocation2 + $0x1e4] sm:$0xf0]  ;;  %v2270_v41 = vld [vmem:[#allocation2 + $0x1e4] sm:$0xf] }
 0x1e1   :  { %v564_v44 = vadd.f32 %v546_v27, %v2751_v19  ;;  %v565_v57 = vadd.f32 %v560_v42, %v2753_v13  ;;  %v1932_v27 = vor.u32 %v2271_v29, %v1931_v2  ;;  %v1933_v42 = vld [vmem:[#allocation2 + $0x1e8] sm:$0xf0]  ;;  %v1907_v2 = vld [vmem:[#allocation2 + $0x1b0] sm:$0xf]  ;;  %v2265_v29 = vld [vmem:[#allocation2 + $0x1b4] sm:$0xf0] }
 0x1e2   :  { %v2261_v19 = vld [vmem:[#allocation2 + $0x194] sm:$0xf0] }
 0x1e3   :  { %v2358_v33 = vpop.eup %2357  ;;  %v568_v5 = vmul.f32 0.5, %v564_v44  ;;  %v569_v25 = vmul.f32 %v565_v57, %v2587_v1  ;;  %v1936_v44 = vor.u32 %v2270_v41, %v1933_v42  ;;  %699 = vmatpush.bf16.msra.mxu0 %v1932_v27  ;;  %v1923_v57 = vld [vmem:[#allocation2 + $0x1d0] sm:$0xf]  ;;  %v2264_v41 = vld [vmem:[#allocation2 + $0x1b4] sm:$0xf]  ;;  %v1908_v27 = vor.u32 %v2265_v29, %v1907_v2 }
 0x1e4   :  { %v2360_v50 = vpop.eup %2359  ;;  %v574_v10 = vmul.f32 0.5, %v2358_v33  ;;  %v2269_v33 = vld [vmem:[#allocation2 + $0x1d4] sm:$0xf0]  ;;  %v1909_v42 = vld [vmem:[#allocation2 + $0x1b8] sm:$0xf0] }
 0x1e5   :  { %2361 = vtanh.f32 %v568_v5  ;;  %v575_v53 = vmul.f32 %v2360_v50, %v2587_v1  ;;  %713 = vmatpush.bf16.msra.mxu1 %v1936_v44  ;;  %v2268_v5 = vld [vmem:[#allocation2 + $0x1d4] sm:$0xf]  ;;  %v1925_v50 = vld [vmem:[#allocation2 + $0x1d8] sm:$0xf0]  ;;  %v1912_v44 = vor.u32 %v2264_v41, %v1909_v42 }
 0x1e6   :  { %2363 = vtanh.f32 %v569_v25  ;;  %v2762_v61 = vadd.f32 0.5, %v574_v10  ;;  %v1924_v25 = vor.u32 %v2269_v33, %v1923_v57  ;;  %v1928_v10 = vor.u32 %v2268_v5, %v1925_v50  ;;  %v1899_v57 = vld [vmem:[#allocation2 + $0x1a0] sm:$0xf]  ;;  %v2263_v33 = vld [vmem:[#allocation2 + $0x1a4] sm:$0xf0] }
 0x1e7   :  { %v2765_v21 = vadd.f32 %v575_v53, %v2614_v63  ;;  %v1915_v53 = vld [vmem:[#allocation2 + $0x1c0] sm:$0xf]  ;;  %v2262_v5 = vld [vmem:[#allocation2 + $0x1a4] sm:$0xf]  ;;  %v1901_v50 = vld [vmem:[#allocation2 + $0x1a8] sm:$0xf0] }
 0x1e8   :  { %592 = vrot.lane.b32.xlu0 %v2762_v61, %s2447_s25  ;;  %700 = vmatpush.bf16.msra.mxu0 %v1924_v25  ;;  %v1900_v25 = vor.u32 %v2263_v33, %v1899_v57 }
 0x1e9   :  { %582 = vrot.lane.b32.xlu2 %v2765_v21, %s2447_s25  ;;  %714 = vmatpush.bf16.msra.mxu1 %v1928_v10  ;;  %v1891_v10 = vld [vmem:[#allocation2 + $0x190] sm:$0xf]  ;;  %v588_v41 = vmul.f32 0.0, %v2765_v21 }
 0x1eb   :  { %v2362_v16 = vpop.eup %2361 }
 0x1ec   :  { %v2364_v8 = vpop.eup %2363  ;;  %v576_v3 = vmul.f32 0.5, %v2362_v16  ;;  %v2267_v16 = vld [vmem:[#allocation2 + $0x1c4] sm:$0xf0] }
 0x1ed   :  { %v577_v28 = vmul.f32 %v2364_v8, %v2587_v1  ;;  %v2266_v8 = vld [vmem:[#allocation2 + $0x1c4] sm:$0xf] }
 0x1ee   :  { %v2772_v59 = vadd.f32 0.5, %v576_v3  ;;  %v1916_v3 = vor.u32 %v2267_v16, %v1915_v53  ;;  %v1904_v53 = vor.u32 %v2262_v5, %v1901_v50  ;;  %v2260_v16 = vld [vmem:[#allocation2 + $0x194] sm:$0xf]  ;;  %v3067_v50 = vld [vmem:[#allocation8_spill] sm:$0xff] }
 0x1ef   :  { %v2775_v62 = vadd.f32 %v577_v28, %v2614_v63  ;;  %v1917_v28 = vld [vmem:[#allocation2 + $0x1c8] sm:$0xf0] }
 0x1f0   :  { %594 = vrot.lane.b32.xlu1 %v2772_v59, %s2447_s25  ;;  %v1920_v13 = vor.u32 %v2266_v8, %v1917_v28  ;;  %701 = vmatpush.bf16.msra.mxu0 %v1916_v3  ;;  %v1893_v8 = vld [vmem:[#allocation2 + $0x198] sm:$0xf0] }
 0x1f1   :  { %584 = vrot.lane.b32.xlu2 %v2775_v62, %s2447_s25  ;;  %v1896_v3 = vor.u32 %v2260_v16, %v1893_v8 }
 0x1f2   :  { %715 = vmatpush.bf16.msra.mxu1 %v1920_v13  ;;  %v1892_v13 = vor.u32 %v2261_v19, %v1891_v10 }
 0x1f4   :  { %702 = vmatpush.bf16.msra.mxu0 %v1908_v27  ;;  %v589_v27 = vmul.f32 0.0, %v2775_v62 }
 0x1f6   :  { %716 = vmatpush.bf16.msra.mxu1 %v1912_v44 }
 0x1f8   :  { %703 = vmatpush.bf16.msra.mxu0 %v1900_v25 }
 0x1fa   :  { %717 = vmatpush.bf16.msra.mxu1 %v1904_v53 }
 0x1fc   :  { %704 = vmatpush.bf16.msra.mxu0 %v1892_v13 }
 0x1fe   :  { %718 = vmatpush.bf16.msra.mxu1 %v1896_v3 }
 0x200   :  { %757 = vmatpush.bf16.msrb.mxu0 %v2477_v12 }
 0x202   :  { %771 = vmatpush.bf16.msrb.mxu1 %v2475_v11 }
 0x204   :  { %758 = vmatpush.bf16.msrb.mxu0 %v2481_v17 }
 0x206   :  { %772 = vmatpush.bf16.msrb.mxu1 %v2483_v18 }
 0x208   :  { %759 = vmatpush.bf16.msrb.mxu0 %v2489_v23 }
 0x20a   :  { %773 = vmatpush.bf16.msrb.mxu1 %v2491_v24 }
 0x20c   :  { %760 = vmatpush.bf16.msrb.mxu0 %v2498_v30 }
 0x20e   :  { %774 = vmatpush.bf16.msrb.mxu1 %v2500_v32 }
 0x210   :  { %761 = vmatpush.bf16.msrb.mxu0 %v2507_v37 }
 0x212   :  { %775 = vmatpush.bf16.msrb.mxu1 %v2510_v39 }
 0x214   :  { %762 = vmatpush.bf16.msrb.mxu0 %v2513_v43 }
 0x216   :  { %776 = vmatpush.bf16.msrb.mxu1 %v2516_v45 }
 0x218   :  { %763 = vmatpush.bf16.msrb.mxu0 %v2521_v49 }
 0x21a   :  { %777 = vmatpush.bf16.msrb.mxu1 %v2524_v51 }
 0x21c   :  { %764 = vmatpush.bf16.msrb.mxu0 %v2527_v55 }
 0x21e   :  { %778 = vmatpush.bf16.msrb.mxu1 %v2530_v56 }
 0x243   :  { %v583_v19 = vpop.permute.xlu2 %582 }
 0x244   :  { %v586_v2 = vmul.f32 %v583_v19, %v2762_v61 }
 0x246   :  { %v2801_v42 = vadd.f32 %v588_v41, %v586_v2 }
 0x248   :  { %2365 = vtanh.f32 %v2801_v42 }
 0x24b   :  { %v585_v28 = vpop.permute.xlu2 %584 }
 0x24c   :  { %v587_v29 = vmul.f32 %v585_v28, %v2772_v59 }
 0x24e   :  { %v2803_v44 = vadd.f32 %v589_v27, %v587_v29  ;;  %v2366_v61 = vpop.eup %2365 }
 0x250   :  { %2367 = vtanh.f32 %v2803_v44 }
 0x256   :  { %v2368_v33 = vpop.eup %2367 }
 0x25a   :  { %v593_v57 = vpop.permute.xlu0 %592 }
 0x25b   :  { %v598_v5 = vmul.f32 %v2366_v61, %v593_v57 }
 0x262   :  { %v595_v59 = vpop.permute.xlu1 %594 }
 0x263   :  { %v599_v21 = vmul.f32 %v2368_v33, %v595_v59 }
 0x265   :  { %v600_v25 = vpack.c.bf16 %v599_v21, %v598_v5 }
 0x267   :  { %705 = vmatmul.bf16.vlgmr.msra.gmra.mxu0 %v600_v25  ;;  %719 = vmatmul.bf16.vlgmr.msra.gmra.mxu1 %v600_v25 }
 0x268   :  { %737 = vmatmul.bf16.vlgmr.msra.gmra.mxu2 %v600_v25  ;;  %751 = vmatmul.bf16.vlgmr.msrb.gmra.mxu3 %v600_v25 }
 0x269   :  { %1019 = vmatpush.bf16.msra.mxu2 %v2566_v31  ;;  %1033 = vmatpush.bf16.msrb.mxu3 %v2568_v40 }
 0x26d   :  { %1020 = vmatpush.bf16.msra.mxu2 %v2571_v46  ;;  %1034 = vmatpush.bf16.msrb.mxu3 %v2575_v47 }
 0x271   :  { %1021 = vmatpush.bf16.msra.mxu2 %v2583_v60  ;;  %1035 = vmatpush.bf16.msrb.mxu3 %v2590_v7  ;;  %v3064_v60 = vld [vmem:[#allocation5_spill] sm:$0xff] }
 0x272   :  { %v159_v7 = vadd.f32 %v3064_v60, %v2554_v6 }
 0x275   :  { %1022 = vmatpush.bf16.msra.mxu2 %v2594_v20  ;;  %1036 = vmatpush.bf16.msrb.mxu3 %v2597_v22 }
 0x277   :  { %765 = vmatmul.bf16.vlgmr.msrb.gmra.mxu0 %v2724_v0  ;;  %779 = vmatmul.bf16.vlgmr.msrb.gmra.mxu1 %v2724_v0 }
 0x279   :  { %1023 = vmatpush.bf16.msra.mxu2 %v2606_v35  ;;  %1037 = vmatpush.bf16.msrb.mxu3 %v2609_v38  ;;  %v3065_v38 = vld [vmem:[#allocation6_spill] sm:$0xff] }
 0x27d   :  { %1024 = vmatpush.bf16.msra.mxu2 %v2617_v54  ;;  %1038 = vmatpush.bf16.msrb.mxu3 %v2621_v4 }
 0x281   :  { %1025 = vmatpush.bf16.msra.mxu2 %v2636_v15  ;;  %1039 = vmatpush.bf16.msrb.mxu3 %v2638_v26  ;;  %v3066_v26 = vld [vmem:[#allocation7_spill] sm:$0xff] }
 0x285   :  { %1026 = vmatpush.bf16.msra.mxu2 %v2641_v34  ;;  %1040 = vmatpush.bf16.msrb.mxu3 %v2644_v36  ;;  %v161_v34 = vadd.f32 %v3066_v26, %v2554_v6 }
 0x2e4   :  { %v2825_v31 = vpop.f32.mrf.mxu0  ;;  %v2827_v40 = vpop.f32.mrf.mxu1 }
 0x2ec   :  { %v2829_v46 = vpop.f32.mrf.mxu0  ;;  %v2831_v47 = vpop.f32.mrf.mxu1 }
 0x2f4   :  { %v766_v20 = vpop.f32.mrf.mxu0  ;;  %v780_v22 = vpop.f32.mrf.mxu1 }
 0x2f5   :  { %v785_v35 = vadd.f32 %v766_v20, %v159_v7  ;;  %v786_v54 = vadd.f32 %v780_v22, %v3065_v38 }
 0x2f7   :  { %v789_v4 = vmul.f32 0.5, %v785_v35  ;;  %v790_v15 = vmul.f32 %v786_v54, %v2587_v1 }
 0x2f9   :  { %2369 = vtanh.f32 %v789_v4 }
 0x2fa   :  { %2371 = vtanh.f32 %v790_v15 }
 0x2fc   :  { %v768_v36 = vpop.f32.mrf.mxu0  ;;  %v782_v0 = vpop.f32.mrf.mxu1 }
 0x2fd   :  { %v787_v62 = vadd.f32 %v768_v36, %v161_v34  ;;  %v788_v10 = vadd.f32 %v782_v0, %v3067_v50  ;;  %v3070_v36 = vld [vmem:[#allocation13_spill] sm:$0xff]  ;;  %v3071_v0 = vld [vmem:[#allocation14_spill] sm:$0xff]  ;;  %v3073_v50 = vld [vmem:[#allocation16_spill] sm:$0xff] }
 0x2ff   :  { %v2370_v53 = vpop.eup %2369  ;;  %v791_v16 = vmul.f32 0.5, %v787_v62  ;;  %v792_v8 = vmul.f32 %v788_v10, %v2587_v1  ;;  %v3072_v62 = vld [vmem:[#allocation15_spill] sm:$0xff]  ;;  %v3074_v10 = vld [vmem:[#allocation17_spill] sm:$0xff] }
 0x300   :  { %v2372_v13 = vpop.eup %2371  ;;  %v797_v3 = vmul.f32 0.5, %v2370_v53  ;;  %v3075_v53 = vld [vmem:[#allocation18_spill] sm:$0xff] }
 0x301   :  { %2373 = vtanh.f32 %v791_v16  ;;  %v798_v19 = vmul.f32 %v2372_v13, %v2587_v1  ;;  %v3079_v16 = vld [vmem:[#allocation22_spill] sm:$0xff]  ;;  %v738_v13 = vpop.f32.mrf.mxu2 }
 0x302   :  { %v801_v28 = vadd.f32 0.5, %v797_v3  ;;  %2375 = vtanh.f32 %v792_v8  ;;  %v3080_v8 = vld [vmem:[#allocation23_spill] sm:$0xff]  ;;  %v752_v3 = vpop.f32.mrf.mxu3 }
 0x303   :  { %v802_v2 = vadd.f32 %v798_v19, %v2614_v63 }
 0x304   :  { %815 = vrot.lane.b32.xlu1 %v801_v28, %s2447_s25 }
 0x305   :  { %805 = vrot.lane.b32.xlu2 %v802_v2, %s2447_s25  ;;  %v811_v21 = vmul.f32 %v802_v2, %v2709_v14  ;;  %v3068_v14 = vld [vmem:[#allocation11_spill] sm:$0xff] }
 0x307   :  { %v2374_v29 = vpop.eup %2373 }
 0x308   :  { %v2376_v41 = vpop.eup %2375  ;;  %v799_v27 = vmul.f32 0.5, %v2374_v29 }
 0x309   :  { %v800_v57 = vmul.f32 %v2376_v41, %v2587_v1  ;;  %v740_v19 = vpop.f32.mrf.mxu2 }
 0x30a   :  { %v803_v61 = vadd.f32 0.5, %v799_v27 }
 0x30b   :  { %v804_v33 = vadd.f32 %v800_v57, %v2614_v63  ;;  %v3081_v57 = vld [vmem:[#allocation26_spill] sm:$0xff] }
 0x30d   :  { %807 = vrot.lane.b32.xlu0 %v804_v33, %s2447_s25  ;;  %817 = vrot.lane.b32.xlu2 %v803_v61, %s2447_s25  ;;  %v812_v20 = vmul.f32 %v804_v33, %v2716_v52  ;;  %v3069_v52 = vld [vmem:[#allocation12_spill] sm:$0xff]  ;;  %v3082_v33 = vld [vmem:[#allocation27_spill] sm:$0xff] }
 0x35f   :  { %v806_v59 = vpop.permute.xlu2 %805 }
 0x360   :  { %v809_v5 = vmul.f32 %v806_v59, %v801_v28  ;;  %v754_v28 = vpop.f32.mrf.mxu3 }
 0x362   :  { %v2850_v25 = vadd.f32 %v811_v21, %v809_v5 }
 0x364   :  { %2377 = vtanh.f32 %v2850_v25 }
 0x367   :  { %v818_v4 = vpop.permute.xlu2 %817 }
 0x36a   :  { %v2378_v38 = vpop.eup %2377 }
 0x376   :  { %v816_v35 = vpop.permute.xlu1 %815 }
 0x377   :  { %v821_v15 = vmul.f32 %v2378_v38, %v816_v35 }
 0x37f   :  { %v808_v60 = vpop.permute.xlu0 %807 }
 0x380   :  { %v810_v7 = vmul.f32 %v808_v60, %v803_v61 }
 0x382   :  { %v2853_v22 = vadd.f32 %v812_v20, %v810_v7 }
 0x384   :  { %2379 = vtanh.f32 %v2853_v22 }
 0x38a   :  { %v2380_v54 = vpop.eup %2379 }
 0x38b   :  { %v822_v26 = vmul.f32 %v2380_v54, %v818_v4 }
 0x38d   :  { %v2857_v34 = vpack.c.bf16 %v822_v26, %v821_v15 }
 0x38f   :  { %832 = vmatmul.bf16.vlgmr.msrb.gmra.mxu2 %v2857_v34  ;;  %846 = vmatmul.bf16.vlgmr.msra.gmra.mxu3 %v2857_v34 }
 0x390   :  { %1114 = vmatpush.bf16.msrb.mxu2 %v2648_v48  ;;  %1128 = vmatpush.bf16.msra.mxu3 %v2650_v58  ;;  %v3076_v48 = vld [vmem:[#allocation19_spill] sm:$0xff]  ;;  %v3077_v58 = vld [vmem:[#allocation20_spill] sm:$0xff] }
 0x394   :  { %1115 = vmatpush.bf16.msrb.mxu2 %v2653_v9  ;;  %1129 = vmatpush.bf16.msra.mxu3 %v3068_v14  ;;  %v3078_v9 = vld [vmem:[#allocation21_spill] sm:$0xff] }
 0x398   :  { %1116 = vmatpush.bf16.msrb.mxu2 %v3069_v52  ;;  %1130 = vmatpush.bf16.msra.mxu3 %v3070_v36 }
 0x39c   :  { %1117 = vmatpush.bf16.msrb.mxu2 %v3071_v0  ;;  %1131 = vmatpush.bf16.msra.mxu3 %v3072_v62 }
 0x3a0   :  { %1118 = vmatpush.bf16.msrb.mxu2 %v3073_v50  ;;  %1132 = vmatpush.bf16.msra.mxu3 %v3074_v10 }
 0x3a4   :  { %1119 = vmatpush.bf16.msrb.mxu2 %v3075_v53  ;;  %1133 = vmatpush.bf16.msra.mxu3 %v3076_v48 }
 0x3a8   :  { %1120 = vmatpush.bf16.msrb.mxu2 %v3077_v58  ;;  %1134 = vmatpush.bf16.msra.mxu3 %v3078_v9 }
 0x3ac   :  { %1121 = vmatpush.bf16.msrb.mxu2 %v3079_v16  ;;  %1135 = vmatpush.bf16.msra.mxu3 %v3080_v8  ;;  %v2011_v16 = vld [vmem:[#allocation2 + $0x280] sm:$0xf]  ;;  %v2291_v8 = vld [vmem:[#allocation2 + $0x284] sm:$0xf0] }
 0x412   :  { %v833_v2 = vpop.f32.mrf.mxu2  ;;  %v847_v29 = vpop.f32.mrf.mxu3 }
 0x413   :  { %v834_v41 = vadd.f32 %v833_v2, %v738_v13  ;;  %v848_v27 = vadd.f32 %v847_v29, %v752_v3  ;;  %v2290_v13 = vld [vmem:[#allocation2 + $0x284] sm:$0xf]  ;;  %v2012_v3 = vor.u32 %v2291_v8, %v2011_v16  ;;  %v2289_v2 = vld [vmem:[#allocation2 + $0x274] sm:$0xf0]  ;;  %v1971_v16 = vld [vmem:[#allocation2 + $0x230] sm:$0xf] }
 0x414   :  { %v2281_v8 = vld [vmem:[#allocation2 + $0x234] sm:$0xf0] }
 0x415   :  { %v852_v61 = vadd.f32 %v834_v41, %v3081_v57  ;;  %v853_v59 = vadd.f32 %v848_v27, %v3082_v33  ;;  %v2288_v41 = vld [vmem:[#allocation2 + $0x274] sm:$0xf]  ;;  %v2005_v27 = vld [vmem:[#allocation2 + $0x278] sm:$0xf0]  ;;  %987 = vmatpush.bf16.msra.mxu0 %v2012_v3 }
 0x416   :  { %v1973_v3 = vld [vmem:[#allocation2 + $0x238] sm:$0xf0] }
 0x417   :  { %v856_v5 = vmul.f32 0.5, %v852_v61  ;;  %v857_v21 = vmul.f32 %v853_v59, %v2587_v1  ;;  %v2008_v59 = vor.u32 %v2288_v41, %v2005_v27  ;;  %v2278_v41 = vld [vmem:[#allocation2 + $0x224] sm:$0xf] }
 0x419   :  { %2381 = vtanh.f32 %v856_v5  ;;  %v1995_v5 = vld [vmem:[#allocation2 + $0x260] sm:$0xf] }
 0x41a   :  { %2383 = vtanh.f32 %v857_v21  ;;  %v835_v60 = vpop.f32.mrf.mxu2  ;;  %v849_v7 = vpop.f32.mrf.mxu3  ;;  %v2287_v21 = vld [vmem:[#allocation2 + $0x264] sm:$0xf0] }
 0x41b   :  { %v836_v20 = vadd.f32 %v835_v60, %v740_v19  ;;  %v850_v35 = vadd.f32 %v849_v7, %v754_v28  ;;  %v2013_v19 = vld [vmem:[#allocation2 + $0x288] sm:$0xf0]  ;;  %v2003_v28 = vld [vmem:[#allocation2 + $0x270] sm:$0xf]  ;;  %v2286_v60 = vld [vmem:[#allocation2 + $0x264] sm:$0xf] }
 0x41c   :  { %v2016_v29 = vor.u32 %v2290_v13, %v2013_v19  ;;  %v2004_v61 = vor.u32 %v2289_v2, %v2003_v28  ;;  %v1997_v7 = vld [vmem:[#allocation2 + $0x268] sm:$0xf0]  ;;  %v2280_v13 = vld [vmem:[#allocation2 + $0x234] sm:$0xf]  ;;  %v1972_v19 = vor.u32 %v2281_v8, %v1971_v16  ;;  %v1963_v2 = vld [vmem:[#allocation2 + $0x220] sm:$0xf] }
 0x41d   :  { %v854_v38 = vadd.f32 %v836_v20, %v3081_v57  ;;  %v855_v54 = vadd.f32 %v850_v35, %v3082_v33  ;;  %v1996_v20 = vor.u32 %v2287_v21, %v1995_v5  ;;  %v2000_v35 = vor.u32 %v2286_v60, %v1997_v7  ;;  %v1955_v5 = vld [vmem:[#allocation2 + $0x210] sm:$0xf]  ;;  %v2277_v21 = vld [vmem:[#allocation2 + $0x214] sm:$0xf0]  ;;  %v2276_v60 = vld [vmem:[#allocation2 + $0x214] sm:$0xf] }
 0x41e   :  { %1001 = vmatpush.bf16.msra.mxu1 %v2016_v29  ;;  %988 = vmatpush.bf16.msra.mxu0 %v2004_v61  ;;  %v1976_v28 = vor.u32 %v2280_v13, %v1973_v3  ;;  %v2279_v29 = vld [vmem:[#allocation2 + $0x224] sm:$0xf0]  ;;  %v1965_v61 = vld [vmem:[#allocation2 + $0x228] sm:$0xf0]  ;;  %v1956_v7 = vor.u32 %v2277_v21, %v1955_v5 }
 0x41f   :  { %v2382_v4 = vpop.eup %2381  ;;  %v858_v15 = vmul.f32 0.5, %v854_v38  ;;  %v859_v26 = vmul.f32 %v855_v54, %v2587_v1  ;;  %v1987_v38 = vld [vmem:[#allocation2 + $0x250] sm:$0xf]  ;;  %v2285_v54 = vld [vmem:[#allocation2 + $0x254] sm:$0xf0]  ;;  %v1964_v27 = vor.u32 %v2279_v29, %v1963_v2 }
 0x420   :  { %v2384_v14 = vpop.eup %2383  ;;  %v864_v52 = vmul.f32 0.5, %v2382_v4  ;;  %v2284_v4 = vld [vmem:[#allocation2 + $0x254] sm:$0xf] }
 0x421   :  { %2385 = vtanh.f32 %v858_v15  ;;  %v865_v36 = vmul.f32 %v2384_v14, %v2587_v1  ;;  %v1989_v15 = vld [vmem:[#allocation2 + $0x258] sm:$0xf0] }
 0x422   :  { %2387 = vtanh.f32 %v859_v26  ;;  %v2884_v0 = vadd.f32 0.5, %v864_v52  ;;  %1002 = vmatpush.bf16.msra.mxu1 %v2008_v59  ;;  %989 = vmatpush.bf16.msra.mxu0 %v1996_v20  ;;  %v1988_v26 = vor.u32 %v2285_v54, %v1987_v38  ;;  %v1992_v14 = vor.u32 %v2284_v4, %v1989_v15  ;;  %v1979_v52 = vld [vmem:[#allocation2 + $0x240] sm:$0xf]  ;;  %v1957_v20 = vld [vmem:[#allocation2 + $0x218] sm:$0xf0] }
 0x423   :  { %v2887_v62 = vadd.f32 %v865_v36, %v2614_v63  ;;  %v2283_v36 = vld [vmem:[#allocation2 + $0x244] sm:$0xf0]  ;;  %v1968_v59 = vor.u32 %v2278_v41, %v1965_v61 }
 0x424   :  { %882 = vrot.lane.b32.xlu2 %v2884_v0, %s2447_s25 }
 0x425   :  { %872 = vrot.lane.b32.xlu0 %v2887_v62, %s2447_s25 }
 0x426   :  { %1003 = vmatpush.bf16.msra.mxu1 %v2000_v35  ;;  %990 = vmatpush.bf16.msra.mxu0 %v1988_v26  ;;  %v1960_v35 = vor.u32 %v2276_v60, %v1957_v20 }
 0x427   :  { %v2386_v50 = vpop.eup %2385 }
 0x428   :  { %v2388_v10 = vpop.eup %2387  ;;  %v866_v53 = vmul.f32 0.5, %v2386_v50  ;;  %v2282_v50 = vld [vmem:[#allocation2 + $0x244] sm:$0xf] }
 0x429   :  { %v867_v48 = vmul.f32 %v2388_v10, %v2587_v1  ;;  %v1981_v10 = vld [vmem:[#allocation2 + $0x248] sm:$0xf0] }
 0x42a   :  { %v2894_v58 = vadd.f32 0.5, %v866_v53  ;;  %v1980_v53 = vor.u32 %v2283_v36, %v1979_v52  ;;  %1004 = vmatpush.bf16.msra.mxu1 %v1992_v14 }
 0x42b   :  { %v2897_v9 = vadd.f32 %v867_v48, %v2614_v63  ;;  %v1984_v48 = vor.u32 %v2282_v50, %v1981_v10 }
 0x42c   :  { %991 = vmatpush.bf16.msra.mxu0 %v1980_v53  ;;  %v3084_v53 = vld [vmem:[#allocation9_spill] sm:$0xff] }
 0x42d   :  { %874 = vrot.lane.b32.xlu1 %v2897_v9, %s2447_s25  ;;  %884 = vrot.lane.b32.xlu0 %v2894_v58, %s2447_s25 }
 0x42e   :  { %1005 = vmatpush.bf16.msra.mxu1 %v1984_v48 }
 0x430   :  { %992 = vmatpush.bf16.msra.mxu0 %v1972_v19 }
 0x432   :  { %1006 = vmatpush.bf16.msra.mxu1 %v1976_v28  ;;  %v3086_v28 = vld [vmem:[#allocation10_spill] sm:$0xff] }
 0x434   :  { %993 = vmatpush.bf16.msra.mxu0 %v1964_v27 }
 0x436   :  { %1007 = vmatpush.bf16.msra.mxu1 %v1968_v59 }
 0x438   :  { %994 = vmatpush.bf16.msra.mxu0 %v1956_v7 }
 0x43a   :  { %1008 = vmatpush.bf16.msra.mxu1 %v1960_v35 }
 0x43c   :  { %1047 = vmatpush.bf16.msrb.mxu0 %v2477_v12 }
 0x43e   :  { %1061 = vmatpush.bf16.msrb.mxu1 %v2475_v11 }
 0x440   :  { %1048 = vmatpush.bf16.msrb.mxu0 %v2481_v17  ;;  %v878_v17 = vmul.f32 %v2887_v62, %v2801_v42 }
 0x442   :  { %1062 = vmatpush.bf16.msrb.mxu1 %v2483_v18 }
 0x444   :  { %1049 = vmatpush.bf16.msrb.mxu0 %v2489_v23 }
 0x446   :  { %1063 = vmatpush.bf16.msrb.mxu1 %v2491_v24 }
 0x448   :  { %1050 = vmatpush.bf16.msrb.mxu0 %v2498_v30  ;;  %v879_v30 = vmul.f32 %v2897_v9, %v2803_v44 }
 0x44a   :  { %1064 = vmatpush.bf16.msrb.mxu1 %v2500_v32 }
 0x44c   :  { %1051 = vmatpush.bf16.msrb.mxu0 %v2507_v37 }
 0x44e   :  { %1065 = vmatpush.bf16.msrb.mxu1 %v2510_v39 }
 0x450   :  { %1052 = vmatpush.bf16.msrb.mxu0 %v2513_v43 }
 0x452   :  { %1066 = vmatpush.bf16.msrb.mxu1 %v2516_v45 }
 0x454   :  { %1053 = vmatpush.bf16.msrb.mxu0 %v2521_v49 }
 0x456   :  { %1067 = vmatpush.bf16.msrb.mxu1 %v2524_v51 }
 0x458   :  { %1054 = vmatpush.bf16.msrb.mxu0 %v2527_v55 }
 0x45a   :  { %1068 = vmatpush.bf16.msrb.mxu1 %v2530_v56  ;;  %v1696_v56 = vld [vmem:[%s3022_s2 + $0x2] ss:$8 sm:$0x3] }
 0x45b   :  { %v195_v42 = vperm.slane %v1696_v56, 0  ;;  %v196_v44 = vperm.slane %v1696_v56, 1 }
 0x45d   :  { %v726_v62 = vadd.f32 %v2827_v40, %v196_v44  ;;  %v727_v4 = vadd.f32 %v2829_v46, %v195_v42  ;;  %v3085_v46 = vld [vmem:[#allocation25_spill] sm:$0xff] }
 0x47e   :  { %v883_v43 = vpop.permute.xlu2 %882 }
 0x497   :  { %v873_v11 = vpop.permute.xlu0 %872 }
 0x498   :  { %v876_v12 = vmul.f32 %v873_v11, %v2884_v0  ;;  %v725_v0 = vadd.f32 %v2825_v31, %v195_v42  ;;  %v3083_v31 = vld [vmem:[#allocation24_spill] sm:$0xff] }
 0x499   :  { %v164_v36 = vadd.f32 %v3083_v31, %v2554_v6 }
 0x49a   :  { %v2922_v18 = vadd.f32 %v878_v17, %v876_v12 }
 0x49c   :  { %2389 = vtanh.f32 %v2922_v18 }
 0x49f   :  { %v875_v23 = vpop.permute.xlu1 %874  ;;  %v885_v45 = vpop.permute.xlu0 %884 }
 0x4a0   :  { %v877_v24 = vmul.f32 %v875_v23, %v2894_v58 }
 0x4a2   :  { %v2928_v32 = vadd.f32 %v879_v30, %v877_v24  ;;  %v2390_v37 = vpop.eup %2389 }
 0x4a3   :  { %v888_v49 = vmul.f32 %v2390_v37, %v883_v43 }
 0x4a4   :  { %2391 = vtanh.f32 %v2928_v32 }
 0x4aa   :  { %v2392_v39 = vpop.eup %2391 }
 0x4ab   :  { %v889_v51 = vmul.f32 %v2392_v39, %v885_v45 }
 0x4ad   :  { %v890_v55 = vpack.c.bf16 %v889_v51, %v888_v49 }
 0x4af   :  { %995 = vmatmul.bf16.vlgmr.msra.gmra.mxu0 %v890_v55  ;;  %1009 = vmatmul.bf16.vlgmr.msra.gmra.mxu1 %v890_v55 }
 0x4b0   :  { %1027 = vmatmul.bf16.vlgmr.msra.gmra.mxu2 %v890_v55  ;;  %1041 = vmatmul.bf16.vlgmr.msrb.gmra.mxu3 %v890_v55 }
 0x4bf   :  { %1055 = vmatmul.bf16.vlgmr.msrb.gmra.mxu0 %v2857_v34  ;;  %1069 = vmatmul.bf16.vlgmr.msrb.gmra.mxu1 %v2857_v34  ;;  %v728_v34 = vadd.f32 %v2831_v47, %v196_v44  ;;  %v166_v47 = vadd.f32 %v3085_v46, %v2554_v6 }
 0x52c   :  { %v996_v58 = vpop.f32.mrf.mxu0  ;;  %v1010_v9 = vpop.f32.mrf.mxu1 }
 0x52d   :  { %v2938_v38 = vadd.f32 %v996_v58, %v725_v0  ;;  %v2940_v54 = vadd.f32 %v1010_v9, %v726_v62 }
 0x533   :  { %v1028_v62 = vpop.f32.mrf.mxu2  ;;  %v1042_v58 = vpop.f32.mrf.mxu3 }
 0x534   :  { %v998_v15 = vpop.f32.mrf.mxu0  ;;  %v1012_v26 = vpop.f32.mrf.mxu1 }
 0x535   :  { %v2944_v14 = vadd.f32 %v998_v15, %v727_v4  ;;  %v2946_v52 = vadd.f32 %v1012_v26, %v728_v34 }
 0x53b   :  { %v1044_v9 = vpop.f32.mrf.mxu3 }
 0x53c   :  { %v1056_v40 = vpop.f32.mrf.mxu0  ;;  %v1070_v50 = vpop.f32.mrf.mxu1 }
 0x53d   :  { %v1075_v10 = vadd.f32 %v1056_v40, %v164_v36  ;;  %v1076_v48 = vadd.f32 %v1070_v50, %v3084_v53 }
 0x53f   :  { %v1079_v16 = vmul.f32 0.5, %v1075_v10  ;;  %v1080_v8 = vmul.f32 %v1076_v48, %v2587_v1 }
 0x541   :  { %2393 = vtanh.f32 %v1079_v16 }
 0x542   :  { %2395 = vtanh.f32 %v1080_v8 }
 0x544   :  { %v1058_v13 = vpop.f32.mrf.mxu0  ;;  %v1072_v3 = vpop.f32.mrf.mxu1 }
 0x545   :  { %v1077_v19 = vadd.f32 %v1058_v13, %v166_v47  ;;  %v1078_v2 = vadd.f32 %v1072_v3, %v3086_v28 }
 0x547   :  { %v2394_v29 = vpop.eup %2393  ;;  %v1081_v41 = vmul.f32 0.5, %v1077_v19  ;;  %v1082_v27 = vmul.f32 %v1078_v2, %v2587_v1 }
 0x548   :  { %v2396_v61 = vpop.eup %2395  ;;  %v1087_v59 = vmul.f32 0.5, %v2394_v29 }
 0x549   :  { %2397 = vtanh.f32 %v1081_v41  ;;  %v1088_v5 = vmul.f32 %v2396_v61, %v2587_v1 }
 0x54a   :  { %v1091_v21 = vadd.f32 0.5, %v1087_v59  ;;  %2399 = vtanh.f32 %v1082_v27 }
 0x54b   :  { %v1092_v60 = vadd.f32 %v1088_v5, %v2614_v63  ;;  %v2075_v5 = vld [vmem:[#allocation2 + $0x300] sm:$0xf] }
 0x54c   :  { %1105 = vrot.lane.b32.xlu0 %v1091_v21, %s2447_s25 }
 0x54d   :  { %1095 = vrot.lane.b32.xlu1 %v1092_v60, %s2447_s25  ;;  %v1101_v43 = vmul.f32 %v1092_v60, %v2850_v25  ;;  %v2306_v60 = vld [vmem:[#allocation2 + $0x304] sm:$0xf] }
 0x54f   :  { %v2398_v6 = vpop.eup %2397 }
 0x550   :  { %v2400_v7 = vpop.eup %2399  ;;  %v1089_v20 = vmul.f32 0.5, %v2398_v6 }
 0x551   :  { %v1090_v35 = vmul.f32 %v2400_v7, %v2587_v1  ;;  %v2077_v7 = vld [vmem:[#allocation2 + $0x308] sm:$0xf0] }
 0x552   :  { %v1093_v11 = vadd.f32 0.5, %v1089_v20  ;;  %v2067_v20 = vld [vmem:[#allocation2 + $0x2f0] sm:$0xf] }
 0x553   :  { %v1094_v12 = vadd.f32 %v1090_v35, %v2614_v63  ;;  %v2305_v35 = vld [vmem:[#allocation2 + $0x2f4] sm:$0xf0] }
 0x555   :  { %1097 = vrot.lane.b32.xlu2 %v1094_v12, %s2447_s25  ;;  %1107 = vrot.lane.b32.xlu1 %v1093_v11, %s2447_s25  ;;  %v1102_v24 = vmul.f32 %v1094_v12, %v2853_v22  ;;  %v1030_v22 = vpop.f32.mrf.mxu2  ;;  %v2069_v12 = vld [vmem:[#allocation2 + $0x2f8] sm:$0xf0] }
 0x5af   :  { %v1098_v17 = vpop.permute.xlu2 %1097 }
 0x5b0   :  { %v1100_v23 = vmul.f32 %v1098_v17, %v1093_v11  ;;  %v2080_v11 = vor.u32 %v2306_v60, %v2077_v7  ;;  %v2068_v17 = vor.u32 %v2305_v35, %v2067_v20  ;;  %v2140_v60 = vld [vmem:[#allocation2 + $0x3f0] sm:$0xf]  ;;  %v2104_v35 = vld [vmem:[#allocation2 + $0x360] sm:$0xf] }
 0x5b2   :  { %v1104_v30 = vadd.f32 %v1102_v24, %v1100_v23  ;;  %1291 = vmatpush.bf16.msra.mxu1 %v2080_v11  ;;  %v2059_v23 = vld [vmem:[#allocation2 + $0x2e0] sm:$0xf]  ;;  %v2303_v24 = vld [vmem:[#allocation2 + $0x2e4] sm:$0xf0] }
 0x5b3   :  { %v2313_v11 = vld [vmem:[#allocation2 + $0x364] sm:$0xf0] }
 0x5b4   :  { %2401 = vtanh.f32 %v1104_v30  ;;  %v2302_v30 = vld [vmem:[#allocation2 + $0x2e4] sm:$0xf] }
 0x5ba   :  { %v2402_v51 = vpop.eup %2401 }
 0x5be   :  { %v1106_v56 = vpop.permute.xlu0 %1105 }
 0x5bf   :  { %v1096_v37 = vpop.permute.xlu1 %1095 }
 0x5c0   :  { %v1099_v39 = vmul.f32 %v1096_v37, %v1091_v21  ;;  %v2307_v21 = vld [vmem:[#allocation2 + $0x304] sm:$0xf0]  ;;  %v2060_v37 = vor.u32 %v2303_v24, %v2059_v23  ;;  %v2100_v23 = vld [vmem:[#allocation2 + $0x350] sm:$0xf]  ;;  %v2312_v24 = vld [vmem:[#allocation2 + $0x354] sm:$0xf0] }
 0x5c1   :  { %v2076_v6 = vor.u32 %v2307_v21, %v2075_v5  ;;  %v2314_v5 = vld [vmem:[#allocation2 + $0x374] sm:$0xf0] }
 0x5c2   :  { %v1103_v45 = vadd.f32 %v1101_v43, %v1099_v39  ;;  %v2061_v39 = vld [vmem:[#allocation2 + $0x2e8] sm:$0xf0] }
 0x5c3   :  { %1277 = vmatpush.bf16.msra.mxu0 %v2076_v6  ;;  %v2064_v43 = vor.u32 %v2302_v30, %v2061_v39  ;;  %v2322_v6 = vld [vmem:[#allocation2 + $0x3f4] sm:$0xf0] }
 0x5c4   :  { %2403 = vtanh.f32 %v1103_v45  ;;  %v2051_v45 = vld [vmem:[#allocation2 + $0x2d0] sm:$0xf]  ;;  %v2141_v20 = vor.u32 %v2322_v6, %v2140_v60  ;;  %v2320_v39 = vld [vmem:[#allocation2 + $0x3d4] sm:$0xf0]  ;;  %v2169_v6 = vld [vmem:[#allocation2 + $0x460] sm:$0xf] }
 0x5c7   :  { %v1108_v49 = vpop.permute.xlu1 %1107  ;;  %1278 = vmatpush.bf16.msra.mxu0 %v2068_v17  ;;  %v2105_v17 = vor.u32 %v2313_v11, %v2104_v35  ;;  %v2165_v35 = vld [vmem:[#allocation2 + $0x450] sm:$0xf]  ;;  %v2328_v11 = vld [vmem:[#allocation2 + $0x454] sm:$0xf0] }
 0x5c8   :  { %v1112_v44 = vmul.f32 %v2402_v51, %v1108_v49  ;;  %v2301_v49 = vld [vmem:[#allocation2 + $0x2d4] sm:$0xf0]  ;;  %v2300_v51 = vld [vmem:[#allocation2 + $0x2d4] sm:$0xf] }
 0x5ca   :  { %v2404_v55 = vpop.eup %2403 }
 0x5cb   :  { %v1111_v42 = vmul.f32 %v2404_v55, %v1106_v56  ;;  %1279 = vmatpush.bf16.msra.mxu0 %v2060_v37  ;;  %v2052_v55 = vor.u32 %v2301_v49, %v2051_v45  ;;  %v2053_v56 = vld [vmem:[#allocation2 + $0x2d8] sm:$0xf0]  ;;  %v2132_v37 = vld [vmem:[#allocation2 + $0x3d0] sm:$0xf] }
 0x5cc   :  { %v2133_v49 = vor.u32 %v2320_v39, %v2132_v37 }
 0x5cd   :  { %v1113_v0 = vpack.c.bf16 %v1112_v44, %v1111_v42  ;;  %v2056_v42 = vor.u32 %v2300_v51, %v2053_v56  ;;  %v2043_v44 = vld [vmem:[#allocation2 + $0x2c0] sm:$0xf] }
 0x5cf   :  { %1122 = vmatmul.bf16.vlgmr.msrb.gmra.mxu2 %v1113_v0  ;;  %1136 = vmatmul.bf16.vlgmr.msra.gmra.mxu3 %v1113_v0  ;;  %v2299_v0 = vld [vmem:[#allocation2 + $0x2c4] sm:$0xf0] }
 0x5d0   :  { %1280 = vmatpush.bf16.msra.mxu0 %v2052_v55 }
 0x652   :  { %v1123_v4 = vpop.f32.mrf.mxu2  ;;  %v1137_v34 = vpop.f32.mrf.mxu3 }
 0x653   :  { %v1124_v15 = vadd.f32 %v1123_v4, %v1028_v62  ;;  %v1138_v25 = vadd.f32 %v1137_v34, %v1042_v58  ;;  %v2298_v62 = vld [vmem:[#allocation2 + $0x2c4] sm:$0xf]  ;;  %v2044_v58 = vor.u32 %v2299_v0, %v2043_v44  ;;  %v2035_v4 = vld [vmem:[#allocation2 + $0x2b0] sm:$0xf]  ;;  %v2297_v34 = vld [vmem:[#allocation2 + $0x2b4] sm:$0xf0] }
 0x655   :  { %v1142_v26 = vadd.f32 %v1124_v15, %v3081_v57  ;;  %v1143_v31 = vadd.f32 %v1138_v25, %v3082_v33  ;;  %1281 = vmatpush.bf16.msra.mxu0 %v2044_v58  ;;  %v2296_v15 = vld [vmem:[#allocation2 + $0x2b4] sm:$0xf]  ;;  %v2036_v25 = vor.u32 %v2297_v34, %v2035_v4 }
 0x657   :  { %v1146_v36 = vmul.f32 0.5, %v1142_v26  ;;  %v1147_v40 = vmul.f32 %v1143_v31, %v2587_v1  ;;  %v2037_v26 = vld [vmem:[#allocation2 + $0x2b8] sm:$0xf0] }
 0x658   :  { %v2040_v31 = vor.u32 %v2296_v15, %v2037_v26  ;;  %v2128_v15 = vld [vmem:[#allocation2 + $0x3c0] sm:$0xf] }
 0x659   :  { %2405 = vtanh.f32 %v1146_v36  ;;  %1282 = vmatpush.bf16.msra.mxu0 %v2036_v25  ;;  %v2027_v36 = vld [vmem:[#allocation2 + $0x2a0] sm:$0xf] }
 0x65a   :  { %2407 = vtanh.f32 %v1147_v40  ;;  %v1125_v50 = vpop.f32.mrf.mxu2  ;;  %v1139_v10 = vpop.f32.mrf.mxu3  ;;  %v2295_v40 = vld [vmem:[#allocation2 + $0x2a4] sm:$0xf0] }
 0x65b   :  { %v1126_v53 = vadd.f32 %v1125_v50, %v1030_v22  ;;  %v1140_v48 = vadd.f32 %v1139_v10, %v1044_v9  ;;  %v2045_v22 = vld [vmem:[#allocation2 + $0x2c8] sm:$0xf0]  ;;  %v2294_v50 = vld [vmem:[#allocation2 + $0x2a4] sm:$0xf]  ;;  %v2028_v10 = vor.u32 %v2295_v40, %v2027_v36  ;;  %v2318_v40 = vld [vmem:[#allocation2 + $0x3b4] sm:$0xf0] }
 0x65c   :  { %v2048_v9 = vor.u32 %v2298_v62, %v2045_v22 }
 0x65d   :  { %v1144_v16 = vadd.f32 %v1126_v53, %v3081_v57  ;;  %v1145_v8 = vadd.f32 %v1140_v48, %v3082_v33  ;;  %v2029_v53 = vld [vmem:[#allocation2 + $0x2a8] sm:$0xf0]  ;;  %v2019_v48 = vld [vmem:[#allocation2 + $0x290] sm:$0xf]  ;;  %1283 = vmatpush.bf16.msra.mxu0 %v2028_v10  ;;  %v2088_v10 = vld [vmem:[#allocation2 + $0x320] sm:$0xf] }
 0x65f   :  { %v2406_v46 = vpop.eup %2405  ;;  %v1148_v47 = vmul.f32 0.5, %v1144_v16  ;;  %v1149_v13 = vmul.f32 %v1145_v8, %v2587_v1  ;;  %v2293_v16 = vld [vmem:[#allocation2 + $0x294] sm:$0xf0]  ;;  %v2032_v8 = vor.u32 %v2294_v50, %v2029_v53  ;;  %v2309_v53 = vld [vmem:[#allocation2 + $0x324] sm:$0xf0] }
 0x660   :  { %v2408_v3 = vpop.eup %2407  ;;  %v1154_v19 = vmul.f32 0.5, %v2406_v46  ;;  %v2292_v46 = vld [vmem:[#allocation2 + $0x294] sm:$0xf] }
 0x661   :  { %2409 = vtanh.f32 %v1148_v47  ;;  %v1155_v28 = vmul.f32 %v2408_v3, %v2587_v1  ;;  %v2021_v47 = vld [vmem:[#allocation2 + $0x298] sm:$0xf0] }
 0x662   :  { %2411 = vtanh.f32 %v1149_v13  ;;  %v2973_v2 = vadd.f32 0.5, %v1154_v19  ;;  %v2020_v13 = vor.u32 %v2293_v16, %v2019_v48  ;;  %v2024_v3 = vor.u32 %v2292_v46, %v2021_v47  ;;  %v2112_v19 = vld [vmem:[#allocation2 + $0x380] sm:$0xf]  ;;  %v2084_v47 = vld [vmem:[#allocation2 + $0x310] sm:$0xf] }
 0x663   :  { %v2976_v29 = vadd.f32 %v1155_v28, %v2614_v63  ;;  %v2315_v28 = vld [vmem:[#allocation2 + $0x384] sm:$0xf0]  ;;  %v2120_v48 = vld [vmem:[#allocation2 + $0x3a0] sm:$0xf]  ;;  %v2089_v16 = vor.u32 %v2309_v53, %v2088_v10 }
 0x664   :  { %1172 = vrot.lane.b32.xlu1 %v2973_v2, %s2447_s25  ;;  %1284 = vmatpush.bf16.msra.mxu0 %v2020_v13  ;;  %v2308_v13 = vld [vmem:[#allocation2 + $0x314] sm:$0xf0] }
 0x665   :  { %1162 = vrot.lane.b32.xlu2 %v2976_v29, %s2447_s25  ;;  %v1168_v51 = vmul.f32 %v2976_v29, %v2922_v18  ;;  %v2096_v18 = vld [vmem:[#allocation2 + $0x340] sm:$0xf]  ;;  %v2311_v29 = vld [vmem:[#allocation2 + $0x344] sm:$0xf0] }
 0x666   :  { %v2097_v25 = vor.u32 %v2311_v29, %v2096_v18  ;;  %v2081_v29 = vld [vmem:[%s3022_s2 + $0x3] ss:$8 sm:$0x3] }
 0x667   :  { %v2410_v57 = vpop.eup %2409 }
 0x668   :  { %v2412_v33 = vpop.eup %2411  ;;  %v1156_v41 = vmul.f32 0.5, %v2410_v57  ;;  %v2144_v57 = vld [vmem:[#allocation2 + $0x400] sm:$0xf] }
 0x669   :  { %v1157_v27 = vmul.f32 %v2412_v33, %v2587_v1  ;;  %v2304_v1 = vld [vmem:[#allocation2 + $0x2f4] sm:$0xf]  ;;  %v2113_v33 = vor.u32 %v2315_v28, %v2112_v19  ;;  %v2085_v19 = vor.u32 %v2308_v13, %v2084_v47  ;;  %v2316_v28 = vld [vmem:[#allocation2 + $0x394] sm:$0xf0]  ;;  %v2333_v47 = vld [vmem:[#allocation2 + $0x4a4] sm:$0xf0] }
 0x66a   :  { %v2983_v61 = vadd.f32 0.5, %v1156_v41  ;;  %v2323_v41 = vld [vmem:[#allocation2 + $0x404] sm:$0xf0] }
 0x66b   :  { %v2986_v59 = vadd.f32 %v1157_v27, %v2614_v63  ;;  %v2072_v63 = vor.u32 %v2304_v1, %v2069_v12  ;;  %v2108_v27 = vld [vmem:[#allocation2 + $0x370] sm:$0xf]  ;;  %v2145_v21 = vor.u32 %v2323_v41, %v2144_v57  ;;  %1448 = vmatpush.bf16.msra.mxu2 %v2113_v33  ;;  %v2136_v1 = vld [vmem:[#allocation2 + $0x3e0] sm:$0xf]  ;;  %v2321_v12 = vld [vmem:[#allocation2 + $0x3e4] sm:$0xf0] }
 0x66c   :  { %v2109_v7 = vor.u32 %v2314_v5, %v2108_v27  ;;  %v2177_v33 = vld [vmem:[#allocation2 + $0x480] sm:$0xf]  ;;  %v2331_v41 = vld [vmem:[#allocation2 + $0x484] sm:$0xf0]  ;;  %v2173_v27 = vld [vmem:[#allocation2 + $0x470] sm:$0xf] }
 0x66d   :  { %1164 = vrot.lane.b32.xlu0 %v2986_v59, %s2447_s25  ;;  %1174 = vrot.lane.b32.xlu2 %v2983_v61, %s2447_s25  ;;  %v1169_v44 = vmul.f32 %v2986_v59, %v2928_v32  ;;  %v2092_v32 = vld [vmem:[#allocation2 + $0x330] sm:$0xf]  ;;  %v2310_v59 = vld [vmem:[#allocation2 + $0x334] sm:$0xf0]  ;;  %v2178_v5 = vor.u32 %v2331_v41, %v2177_v33  ;;  %v2337_v33 = vld [vmem:[#allocation2 + $0x4e4] sm:$0xf0] }
 0x66e   :  { %1292 = vmatpush.bf16.msra.mxu1 %v2072_v63  ;;  %1462 = vmatpush.bf16.msrb.mxu3 %v2145_v21  ;;  %v2137_v63 = vor.u32 %v2321_v12, %v2136_v1  ;;  %v2093_v36 = vor.u32 %v2310_v59, %v2092_v32  ;;  %v2330_v21 = vld [vmem:[#allocation2 + $0x474] sm:$0xf0]  ;;  %v2166_v1 = vor.u32 %v2328_v11, %v2165_v35 }
 0x66f   :  { %1449 = vmatpush.bf16.msra.mxu2 %v2109_v7  ;;  %1548 = vmatpush.bf16.msrb.mxu0 %v2178_v5  ;;  %v2174_v60 = vor.u32 %v2330_v21, %v2173_v27  ;;  %v2329_v7 = vld [vmem:[#allocation2 + $0x464] sm:$0xf0]  ;;  %v2146_v27 = vld [vmem:[%s3022_s2 + $0x4] ss:$8 sm:$0x3] }
 0x670   :  { %v1498_v21 = vperm.slane %v2146_v27, 0 }
 0x672   :  { %1293 = vmatpush.bf16.msra.mxu1 %v2064_v43  ;;  %1463 = vmatpush.bf16.msrb.mxu3 %v2141_v20  ;;  %v2101_v43 = vor.u32 %v2312_v24, %v2100_v23  ;;  %v2170_v20 = vor.u32 %v2329_v7, %v2169_v6 }
 0x673   :  { %1450 = vmatpush.bf16.msra.mxu2 %v2105_v17  ;;  %1549 = vmatpush.bf16.msrb.mxu0 %v2174_v60 }
 0x676   :  { %1294 = vmatpush.bf16.msra.mxu1 %v2056_v42  ;;  %1464 = vmatpush.bf16.msrb.mxu3 %v2137_v63 }
 0x677   :  { %1451 = vmatpush.bf16.msra.mxu2 %v2101_v43  ;;  %1550 = vmatpush.bf16.msrb.mxu0 %v2170_v20 }
 0x67a   :  { %1295 = vmatpush.bf16.msra.mxu1 %v2048_v9  ;;  %1465 = vmatpush.bf16.msrb.mxu3 %v2133_v49 }
 0x67b   :  { %1452 = vmatpush.bf16.msra.mxu2 %v2097_v25  ;;  %1551 = vmatpush.bf16.msrb.mxu0 %v2166_v1  ;;  %v2200_v1 = vld [vmem:[#allocation2 + $0x4d0] sm:$0xf] }
 0x67e   :  { %1296 = vmatpush.bf16.msra.mxu1 %v2040_v31  ;;  %v2124_v31 = vld [vmem:[#allocation2 + $0x3b0] sm:$0xf] }
 0x67f   :  { %v2125_v50 = vor.u32 %v2318_v40, %v2124_v31  ;;  %1453 = vmatpush.bf16.msra.mxu2 %v2093_v36 }
 0x682   :  { %1297 = vmatpush.bf16.msra.mxu1 %v2032_v8  ;;  %v2317_v8 = vld [vmem:[#allocation2 + $0x3a4] sm:$0xf0] }
 0x683   :  { %v2121_v46 = vor.u32 %v2317_v8, %v2120_v48  ;;  %1454 = vmatpush.bf16.msra.mxu2 %v2089_v16  ;;  %v2190_v48 = vld [vmem:[#allocation2 + $0x4b0] sm:$0xf]  ;;  %v2334_v16 = vld [vmem:[#allocation2 + $0x4b4] sm:$0xf0] }
 0x684   :  { %v2191_v8 = vor.u32 %v2334_v16, %v2190_v48 }
 0x686   :  { %1298 = vmatpush.bf16.msra.mxu1 %v2024_v3  ;;  %v2116_v3 = vld [vmem:[#allocation2 + $0x390] sm:$0xf] }
 0x687   :  { %v2117_v57 = vor.u32 %v2316_v28, %v2116_v3  ;;  %1455 = vmatpush.bf16.msra.mxu2 %v2085_v19  ;;  %v2182_v3 = vld [vmem:[#allocation2 + $0x490] sm:$0xf]  ;;  %v2332_v19 = vld [vmem:[#allocation2 + $0x494] sm:$0xf0] }
 0x688   :  { %v2183_v28 = vor.u32 %v2332_v19, %v2182_v3 }
 0x6bf   :  { %v1163_v30 = vpop.permute.xlu2 %1162 }
 0x6c0   :  { %v1166_v45 = vmul.f32 %v1163_v30, %v2973_v2 }
 0x6c2   :  { %v1170_v55 = vadd.f32 %v1168_v51, %v1166_v45 }
 0x6c4   :  { %2413 = vtanh.f32 %v1170_v55 }
 0x6c7   :  { %v1175_v22 = vpop.permute.xlu2 %1174 }
 0x6ca   :  { %v2414_v58 = vpop.eup %2413 }
 0x6d6   :  { %v1173_v62 = vpop.permute.xlu1 %1172 }
 0x6d7   :  { %v1178_v9 = vmul.f32 %v2414_v58, %v1173_v62  ;;  %v2153_v58 = vld [vmem:[#allocation2 + $0x420] sm:$0xf] }
 0x6df   :  { %v1165_v56 = vpop.permute.xlu0 %1164 }
 0x6e0   :  { %v1167_v42 = vmul.f32 %v1165_v56, %v2983_v61  ;;  %v2319_v61 = vld [vmem:[#allocation2 + $0x3c4] sm:$0xf0] }
 0x6e1   :  { %v2129_v26 = vor.u32 %v2319_v61, %v2128_v15  ;;  %v1350_v61 = vperm.slane %v2081_v29, 0 }
 0x6e2   :  { %v1171_v0 = vadd.f32 %v1169_v44, %v1167_v42  ;;  %v2161_v42 = vld [vmem:[#allocation2 + $0x440] sm:$0xf]  ;;  %v2327_v44 = vld [vmem:[#allocation2 + $0x444] sm:$0xf0] }
 0x6e3   :  { %1466 = vmatpush.bf16.msrb.mxu3 %v2129_v26 }
 0x6e4   :  { %2415 = vtanh.f32 %v1171_v0  ;;  %v2162_v0 = vor.u32 %v2327_v44, %v2161_v42 }
 0x6e6   :  { %1552 = vmatpush.bf16.msrb.mxu0 %v2162_v0 }
 0x6e7   :  { %1467 = vmatpush.bf16.msrb.mxu3 %v2125_v50 }
 0x6ea   :  { %v2416_v2 = vpop.eup %2415 }
 0x6eb   :  { %v1179_v4 = vmul.f32 %v2416_v2, %v1175_v22  ;;  %1468 = vmatpush.bf16.msrb.mxu3 %v2121_v46  ;;  %v2324_v22 = vld [vmem:[#allocation2 + $0x414] sm:$0xf0]  ;;  %v2186_v46 = vld [vmem:[#allocation2 + $0x4a0] sm:$0xf] }
 0x6ec   :  { %v2187_v13 = vor.u32 %v2333_v47, %v2186_v46 }
 0x6ed   :  { %v1180_v34 = vpack.c.bf16 %v1179_v4, %v1178_v9  ;;  %v2194_v4 = vld [vmem:[#allocation2 + $0x4c0] sm:$0xf] }
 0x6ef   :  { %1285 = vmatmul.bf16.vlgmr.msra.gmra.mxu0 %v1180_v34  ;;  %1299 = vmatmul.bf16.vlgmr.msra.gmra.mxu1 %v1180_v34  ;;  %v2335_v34 = vld [vmem:[#allocation2 + $0x4c4] sm:$0xf0] }
 0x6f0   :  { %1469 = vmatpush.bf16.msrb.mxu3 %v2117_v57  ;;  %v2195_v18 = vor.u32 %v2335_v34, %v2194_v4  ;;  %v2204_v57 = vld [vmem:[#allocation2 + $0x4e0] sm:$0xf] }
 0x6f1   :  { %v2205_v41 = vor.u32 %v2337_v33, %v2204_v57 }
 0x6f2   :  { %1610 = vmatpush.bf16.msrb.mxu1 %v2195_v18 }
 0x6f3   :  { %1654 = vmatpush.bf16.msrb.mxu2 %v2205_v41 }
 0x6f6   :  { %1611 = vmatpush.bf16.msrb.mxu1 %v2191_v8 }
 0x6fa   :  { %1612 = vmatpush.bf16.msrb.mxu1 %v2187_v13 }
 0x6fe   :  { %1613 = vmatpush.bf16.msrb.mxu1 %v2183_v28 }
 0x76c   :  { %v1286_v12 = vpop.f32.mrf.mxu0  ;;  %v1300_v17 = vpop.f32.mrf.mxu1 }
 0x76d   :  { %v1305_v63 = vadd.f32 %v1286_v12, %v2938_v38  ;;  %v1306_v23 = vadd.f32 %v1300_v17, %v2940_v54  ;;  %v2157_v38 = vld [vmem:[#allocation2 + $0x430] sm:$0xf]  ;;  %v2326_v54 = vld [vmem:[#allocation2 + $0x434] sm:$0xf0] }
 0x76e   :  { %v2158_v62 = vor.u32 %v2326_v54, %v2157_v38  ;;  %v2336_v12 = vld [vmem:[#allocation2 + $0x4d4] sm:$0xf0] }
 0x76f   :  { %v1309_v43 = vmax.f32 %v1305_v63, 0.0  ;;  %v1310_v45 = vmax.f32 %v1306_v23, 0.0  ;;  %v2201_v17 = vor.u32 %v2336_v12, %v2200_v1  ;;  %v2179_v63 = vld [vmem:[%s3022_s2 + $0x5] ss:$8 sm:$0x3] }
 0x770   :  { %1553 = vmatpush.bf16.msrb.mxu0 %v2158_v62 }
 0x771   :  { %1655 = vmatpush.bf16.msrb.mxu2 %v2201_v17 }
 0x774   :  { %v1288_v24 = vpop.f32.mrf.mxu0  ;;  %v1302_v30 = vpop.f32.mrf.mxu1 }
 0x775   :  { %v1307_v37 = vadd.f32 %v1288_v24, %v2944_v14  ;;  %v1308_v39 = vadd.f32 %v1302_v30, %v2946_v52  ;;  %v2325_v14 = vld [vmem:[#allocation2 + $0x424] sm:$0xf0]  ;;  %v2149_v52 = vld [vmem:[#allocation2 + $0x410] sm:$0xf]  ;;  %v1576_v24 = vperm.slane %v2179_v63, 0 }
 0x776   :  { %v2154_v2 = vor.u32 %v2325_v14, %v2153_v58  ;;  %v2150_v9 = vor.u32 %v2324_v22, %v2149_v52 }
 0x777   :  { %v1311_v49 = vmax.f32 %v1307_v37, 0.0  ;;  %v1312_v51 = vmax.f32 %v1308_v39, 0.0 }
 0x778   :  { %1554 = vmatpush.bf16.msrb.mxu0 %v2154_v2 }
 0x779   :  { %v1313_v55 = vpack.c.bf16 %v1311_v49, %v1309_v43  ;;  %v1314_v56 = vpack.c.bf16 %v1312_v51, %v1310_v45  ;;  %v2197_v51 = vld [vmem:[%s3022_s2 + $0x6] ss:$8 sm:$0x3] }
 0x77b   :  { %1456 = vmatmul.bf16.vlgmr.msra.gmra.mxu2 %v1313_v55  ;;  %1470 = vmatmul.bf16.vlgmr.msrb.gmra.mxu3 %v1314_v56  ;;  %v1630_v55 = vperm.slane %v2197_v51, 0 }
 0x77c   :  { %1555 = vmatpush.bf16.msrb.mxu0 %v2150_v9 }
 0x7fe   :  { %v1457_v15 = vpop.f32.mrf.mxu2  ;;  %v1471_v25 = vpop.f32.mrf.mxu3 }
 0x7ff   :  { %v1458_v26 = vadd.f32 %v1457_v15, %v1350_v61 }
 0x801   :  { %v1472_v59 = vadd.f32 %v1471_v25, %v1458_v26 }
 0x803   :  { %v1476_v50 = vmax.f32 %v1472_v59, 0.0 }
 0x806   :  { %v1459_v32 = vpop.f32.mrf.mxu2  ;;  %v1473_v36 = vpop.f32.mrf.mxu3 }
 0x807   :  { %v1460_v31 = vadd.f32 %v1459_v32, %v1350_v61 }
 0x809   :  { %v1474_v40 = vadd.f32 %v1473_v36, %v1460_v31 }
 0x80b   :  { %v1477_v10 = vmax.f32 %v1474_v40, 0.0 }
 0x80d   :  { %v1478_v53 = vpack.c.bf16 %v1477_v10, %v1476_v50 }
 0x80f   :  { %1556 = vmatmul.bf16.vlgmr.msrb.gmra.mxu0 %v1478_v53 }
 0x88c   :  { %v1557_v5 = vpop.f32.mrf.mxu0 }
 0x88d   :  { %v1558_v60 = vadd.f32 %v1557_v5, %v1498_v21 }
 0x88f   :  { %v1562_v20 = vmax.f32 %v1558_v60, 0.0 }
 0x894   :  { %v1559_v6 = vpop.f32.mrf.mxu0 }
 0x895   :  { %v1560_v7 = vadd.f32 %v1559_v6, %v1498_v21 }
 0x897   :  { %v1563_v35 = vmax.f32 %v1560_v7, 0.0 }
 0x899   :  { %v1564_v11 = vpack.c.bf16 %v1563_v35, %v1562_v20 }
 0x89b   :  { %2196 = vmatmul.msk.bf16.vlgmr.msrb.gmra.mxu1 %vm1602_vm2, %v1564_v11 }
 0x918   :  { %v1615_v23 = vpop.f32.mrf.mxu1 }
 0x919   :  { %v1616_v30 = vadd.f32 %v1615_v23, %v1576_v24 }
 0x91b   :  { %v1620_v43 = vmax.f32 %v1616_v30, 0.0 }
 0x920   :  { %v1617_v37 = vpop.f32.mrf.mxu1 }
 0x921   :  { %v1618_v39 = vadd.f32 %v1617_v37, %v1576_v24 }
 0x923   :  { %v1621_v45 = vmax.f32 %v1618_v39, 0.0 }
 0x925   :  { %v1622_v49 = vpack.c.bf16 %v1621_v45, %v1620_v43 }
 0x927   :  { %2206 = vmatmul.msk.bf16.vlgmr.msrb.gmra.mxu2 %vm1644_vm3, %v1622_v49 }
 0x9aa   :  { %v1657_v56 = vpop.f32.mrf.mxu2 }
 0x9ab   :  { %v1658_v42 = vadd.f32 %v1657_v56, %v1630_v55 }
 0x9ad   :  { %1662 = vst [vmem:[%s3023_s3] sm:$0xff] %v1658_v42 }
 0x9b2   :  { %v1659_v44 = vpop.f32.mrf.mxu2 }
 0x9b3   :  { %v1660_v0 = vadd.f32 %v1659_v44, %v1630_v55 }
 0x9b5   :  { %1663 = vst [vmem:[%s3023_s3 + $0x8] sm:$0xff] %v1660_v0 }
 0x9b6   :  { %1668 = vsyncpa [#allocation3], 1 }

</bundles_post_ra>
